<compile_context>
chip_gen: v7x
topology: tpu7x:2x2x1
jax: 0.10.0
libtpu: 0.0.40
codegen_flags: <defaults>
</compile_context>

<pallas_src>
import jax
import jax.numpy as jnp
from jax import lax
from jax.experimental import pallas as pl
from jax.experimental.pallas import tpu as pltpu

_LANE = 128  # lane-tile width; each 3H half of the fused weight is padded to a multiple


def _gru2_kernel(x_ref,        # (T*B, F)      time-major flattened input
                 wih0_ref,     # (F, 3H)
                 bih0_ref,     # (1, 3H)
                 wcat_ref,     # (H, 2*PADH)   [Wih1^T | 0 | Whh0^T | 0]
                 bcat_ref,     # (1, 2*PADH)   [bih1   | 0 | bhh0   | 0]
                 whh1_ref,     # (H, 3H)
                 bhh1_ref,     # (1, 3H)
                 bhh0p_ref,    # (1, PADH)     [bhh0 | 0]  (gh0 carry init: h0(0)=0)
                 out_ref,      # (T, B, H)     time-major output
                 hid_ref):     # (B, H)        final last-layer hidden
    T, B, H = out_ref.shape
    PADH = wcat_ref.shape[1] // 2

    # ---- Hoisted layer-0 input projection for ALL timesteps (no time dependence).
    gi0_all = (jnp.dot(x_ref[...], wih0_ref[...],
                       preferred_element_type=jnp.float32)
               + bih0_ref[...])                                # (T*B, 3H)

    # Loop-resident weights and pre-broadcast biases (hoisted: no per-iter broadcast).
    wcat = wcat_ref[...]
    whh1 = whh1_ref[...]
    bcatB = jnp.broadcast_to(bcat_ref[...], (B, 2 * PADH))
    bhh1B = jnp.broadcast_to(bhh1_ref[...], (B, 3 * H))

    h0 = jnp.zeros((B, H), jnp.float32)
    h1 = jnp.zeros((B, H), jnp.float32)
    # gh0 carry = h0_prev @ Whh0^T + bhh0 (lane-padded); with h0(0)=0 it is just bhh0.
    gh0 = jnp.broadcast_to(bhh0p_ref[...], (B, PADH))

    # Fully unrolled time recurrence; h0 / h1 / gh0 stay register-resident.
    for t in range(T):
        # ---- layer 0 (input projection precomputed; gh0 carried from fused dot) ----
        gi0 = gi0_all[t * B:(t + 1) * B]                       # contiguous (B, 3H) rows
        rz0 = jax.nn.sigmoid(gi0[:, :2 * H] + gh0[:, :2 * H])
        r0 = rz0[:, :H]
        z0 = rz0[:, H:]
        n0 = jnp.tanh(gi0[:, 2 * H:] + r0 * gh0[:, 2 * H:3 * H])
        h0 = n0 + z0 * (h0 - n0)

        # ---- fused dot: gi1(t) in lanes [0:3H], gh0(t+1) in lanes [PADH:PADH+3H] ----
        fused = jnp.dot(h0, wcat, preferred_element_type=jnp.float32) + bcatB
        gh1 = jnp.dot(h1, whh1, preferred_element_type=jnp.float32) + bhh1B

        # ---- layer 1 ----
        rz1 = jax.nn.sigmoid(fused[:, :2 * H] + gh1[:, :2 * H])
        r1 = rz1[:, :H]
        z1 = rz1[:, H:]
        n1 = jnp.tanh(fused[:, 2 * H:3 * H] + r1 * gh1[:, 2 * H:])
        h1 = n1 + z1 * (h1 - n1)

        gh0 = fused[:, PADH:]                                  # carry for step t+1

        out_ref[t] = h1                                        # contiguous (B, H) store

    hid_ref[...] = h1                                          # single final write


def rnn_encoder_forward(x_btf, params):
    """x_btf: (B, T, F) float32 (batch_first, as in the PyTorch module)."""
    B, T, F = x_btf.shape
    H = params["whh0"].shape[1]          # whh0: (3H, H) -> hidden size is the 2nd dim
    PADH = ((3 * H + _LANE - 1) // _LANE) * _LANE

    # Wrapper-side layout prep (all tiny, one-time):
    # time-major flattened input (T*B, F)
    x_tbf = jnp.transpose(x_btf, (1, 0, 2)).reshape(T * B, F)

    # Fused weight [Wih1^T | pad | Whh0^T | pad] and bias [bih1 | 0 | bhh0 | 0].
    wcat = jnp.zeros((H, 2 * PADH), jnp.float32)
    wcat = wcat.at[:, 0:3 * H].set(params["wih1"].T)
    wcat = wcat.at[:, PADH:PADH + 3 * H].set(params["whh0"].T)
    bcat = jnp.zeros((1, 2 * PADH), jnp.float32)
    bcat = bcat.at[0, 0:3 * H].set(params["bih1"])
    bcat = bcat.at[0, PADH:PADH + 3 * H].set(params["bhh0"])
    bhh0p = jnp.zeros((1, PADH), jnp.float32).at[0, :3 * H].set(params["bhh0"])

    vmem = pl.BlockSpec(memory_space=pltpu.MemorySpace.VMEM)

    out_tbh, hidden = pl.pallas_call(
        _gru2_kernel,
        out_shape=(
            jax.ShapeDtypeStruct((T, B, H), jnp.float32),   # time-major gru_out
            jax.ShapeDtypeStruct((B, H), jnp.float32),      # final hidden (last layer)
        ),
        in_specs=[vmem] * 8,
        out_specs=(vmem, vmem),
    )(
        x_tbf,
        params["wih0"].T,                 # (F, 3H)
        params["bih0"][None, :],          # (1, 3H)
        wcat, bcat,                       # (H, 2*PADH), (1, 2*PADH)
        params["whh1"].T,                 # (H, 3H)
        params["bhh1"][None, :],          # (1, 3H)
        bhh0p,                            # (1, PADH)
    )
    gru_out = jnp.transpose(out_tbh, (1, 0, 2))              # back to batch_first
    return gru_out, hidden


def _reference_forward(x_btf, params):
    """Pure-JAX reference (lax.scan) mirroring torch.nn.GRU semantics."""
    H = params["whh0"].shape[1]
    B = x_btf.shape[0]

    def cell(x, h, wih, whh, bih, bhh):
        gi = x @ wih.T + bih
        gh = h @ whh.T + bhh
        r = jax.nn.sigmoid(gi[:, :H] + gh[:, :H])
        z = jax.nn.sigmoid(gi[:, H:2 * H] + gh[:, H:2 * H])
        n = jnp.tanh(gi[:, 2 * H:] + r * gh[:, 2 * H:])
        return (1.0 - z) * n + z * h

    def step(carry, x_t):
        h0, h1 = carry
        h0 = cell(x_t, h0, params["wih0"], params["whh0"], params["bih0"], params["bhh0"])
        h1 = cell(h0, h1, params["wih1"], params["whh1"], params["bih1"], params["bhh1"])
        return (h0, h1), h1

    x_tbf = jnp.transpose(x_btf, (1, 0, 2))
    h_init = (jnp.zeros((B, H), jnp.float32), jnp.zeros((B, H), jnp.float32))
    (h0, h1), out_tbh = lax.scan(step, h_init, x_tbf)
    return jnp.transpose(out_tbh, (1, 0, 2)), h1


def init_params(key, input_feature_len, hidden_size):
    """Deterministic init matching nn.GRU parameter shapes; U(-k, k), k=1/sqrt(H)."""
    H, F = hidden_size, input_feature_len
    k = 1.0 / jnp.sqrt(jnp.float32(H))
    keys = jax.random.split(key, 8)
    u = lambda kk, shape: jax.random.uniform(kk, shape, jnp.float32, -k, k)
    return {
        "wih0": u(keys[0], (3 * H, F)),
        "whh0": u(keys[1], (3 * H, H)),
        "bih0": u(keys[2], (3 * H,)),
        "bhh0": u(keys[3], (3 * H,)),
        "wih1": u(keys[4], (3 * H, H)),
        "whh1": u(keys[5], (3 * H, H)),
        "bih1": u(keys[6], (3 * H,)),
        "bhh1": u(keys[7], (3 * H,)),
    }


if __name__ == "__main__":
    # Module config: rnn_num_layers=2, input_feature_len=4, sequence_len=8,
    # hidden_size=32, bidirectional=False, rnn_dropout=0.0 (eval semantics).
    B, T, F, H = 2, 8, 4, 32

    key = jax.random.PRNGKey(0)
    k_x, k_p = jax.random.split(key)
    x = jax.random.normal(k_x, (B, T, F), dtype=jnp.float32)
    params = init_params(k_p, F, H)

    gru_out, hidden = rnn_encoder_forward(x, params)
    gru_out, hidden = jax.block_until_ready((gru_out, hidden))

    ref_out, ref_hidden = _reference_forward(x, params)
    assert gru_out.shape == (B, T, H) and hidden.shape == (B, H)
    assert jnp.allclose(gru_out, ref_out, atol=1e-5, rtol=1e-5)
    assert jnp.allclose(hidden, ref_hidden, atol=1e-5, rtol=1e-5)

    print("KERNEL_OK")
</pallas_src>

<mosaic_0001>
module attributes {stable_mosaic.version = 11 : i64} {
  func.func @_gru2_kernel(%arg0: memref<16x4xf32, #tpu.memory_space<vmem>>, %arg1: memref<4x96xf32, #tpu.memory_space<vmem>>, %arg2: memref<1x96xf32, #tpu.memory_space<vmem>>, %arg3: memref<32x256xf32, #tpu.memory_space<vmem>>, %arg4: memref<1x256xf32, #tpu.memory_space<vmem>>, %arg5: memref<32x96xf32, #tpu.memory_space<vmem>>, %arg6: memref<1x96xf32, #tpu.memory_space<vmem>>, %arg7: memref<1x128xf32, #tpu.memory_space<vmem>>, %arg8: memref<8x2x32xf32, #tpu.memory_space<vmem>>, %arg9: memref<2x32xf32, #tpu.memory_space<vmem>>) attributes {dimension_semantics = [], scalar_prefetch = 0 : i64, scratch_operands = 0 : i64, tpu.core_type = #tpu.core_type<tc>} {
    %c0 = arith.constant 0 : index
    %c0_0 = arith.constant 0 : index
    %0 = vector.load %arg0[%c0, %c0_0] : memref<16x4xf32, #tpu.memory_space<vmem>>, vector<16x4xf32>
    %c0_1 = arith.constant 0 : index
    %c0_2 = arith.constant 0 : index
    %1 = vector.load %arg1[%c0_1, %c0_2] : memref<4x96xf32, #tpu.memory_space<vmem>>, vector<4x96xf32>
    %cst = arith.constant dense<0.000000e+00> : vector<16x96xf32>
    %2 = tpu.matmul %0, %1, %cst {dimension_numbers = #tpu.dot_dimension_numbers<[1], [0], [0], [1], [0, 0, 1, 1], [], []>} : vector<16x4xf32>, vector<4x96xf32>, vector<16x96xf32> -> vector<16x96xf32>
    %c0_3 = arith.constant 0 : index
    %c0_4 = arith.constant 0 : index
    %3 = vector.load %arg2[%c0_3, %c0_4] : memref<1x96xf32, #tpu.memory_space<vmem>>, vector<1x96xf32>
    %4 = vector.broadcast %3 : vector<1x96xf32> to vector<16x96xf32>
    %5 = arith.addf %2, %4 : vector<16x96xf32>
    %c0_5 = arith.constant 0 : index
    %c0_6 = arith.constant 0 : index
    %6 = vector.load %arg3[%c0_5, %c0_6] : memref<32x256xf32, #tpu.memory_space<vmem>>, vector<32x256xf32>
    %c0_7 = arith.constant 0 : index
    %c0_8 = arith.constant 0 : index
    %7 = vector.load %arg5[%c0_7, %c0_8] : memref<32x96xf32, #tpu.memory_space<vmem>>, vector<32x96xf32>
    %c0_9 = arith.constant 0 : index
    %c0_10 = arith.constant 0 : index
    %8 = vector.load %arg4[%c0_9, %c0_10] : memref<1x256xf32, #tpu.memory_space<vmem>>, vector<1x256xf32>
    %9 = vector.shape_cast %8 : vector<1x256xf32> to vector<1x256xf32>
    %10 = vector.broadcast %9 : vector<1x256xf32> to vector<2x256xf32>
    %c0_11 = arith.constant 0 : index
    %c0_12 = arith.constant 0 : index
    %11 = vector.load %arg6[%c0_11, %c0_12] : memref<1x96xf32, #tpu.memory_space<vmem>>, vector<1x96xf32>
    %12 = vector.shape_cast %11 : vector<1x96xf32> to vector<1x96xf32>
    %13 = vector.broadcast %12 : vector<1x96xf32> to vector<2x96xf32>
    %cst_13 = arith.constant 0.000000e+00 : f32
    %14 = vector.broadcast %cst_13 : f32 to vector<2x32xf32>
    %cst_14 = arith.constant 0.000000e+00 : f32
    %15 = vector.broadcast %cst_14 : f32 to vector<2x32xf32>
    %c0_15 = arith.constant 0 : index
    %c0_16 = arith.constant 0 : index
    %16 = vector.load %arg7[%c0_15, %c0_16] : memref<1x128xf32, #tpu.memory_space<vmem>>, vector<1x128xf32>
    %17 = vector.shape_cast %16 : vector<1x128xf32> to vector<1x128xf32>
    %18 = vector.broadcast %17 : vector<1x128xf32> to vector<2x128xf32>
    %19 = vector.extract_strided_slice %5 {offsets = [0, 0], sizes = [2, 96], strides = [1, 1]} : vector<16x96xf32> to vector<2x96xf32>
    %20 = vector.extract_strided_slice %19 {offsets = [0, 0], sizes = [2, 64], strides = [1, 1]} : vector<2x96xf32> to vector<2x64xf32>
    %21 = vector.extract_strided_slice %18 {offsets = [0, 0], sizes = [2, 64], strides = [1, 1]} : vector<2x128xf32> to vector<2x64xf32>
    %22 = arith.addf %20, %21 : vector<2x64xf32>
    %23 = arith.negf %22 : vector<2x64xf32>
    %24 = math.exp %23 : vector<2x64xf32>
    %cst_17 = arith.constant 1.000000e+00 : f32
    %25 = vector.broadcast %cst_17 : f32 to vector<2x64xf32>
    %26 = arith.addf %25, %24 : vector<2x64xf32>
    %27 = arith.divf %25, %26 : vector<2x64xf32>
    %28 = vector.extract_strided_slice %27 {offsets = [0, 0], sizes = [2, 32], strides = [1, 1]} : vector<2x64xf32> to vector<2x32xf32>
    %29 = vector.extract_strided_slice %27 {offsets = [0, 32], sizes = [2, 32], strides = [1, 1]} : vector<2x64xf32> to vector<2x32xf32>
    %30 = vector.extract_strided_slice %19 {offsets = [0, 64], sizes = [2, 32], strides = [1, 1]} : vector<2x96xf32> to vector<2x32xf32>
    %31 = vector.extract_strided_slice %18 {offsets = [0, 64], sizes = [2, 32], strides = [1, 1]} : vector<2x128xf32> to vector<2x32xf32>
    %32 = arith.mulf %28, %31 : vector<2x32xf32>
    %33 = arith.addf %30, %32 : vector<2x32xf32>
    %34 = math.tanh %33 : vector<2x32xf32>
    %35 = arith.subf %14, %34 : vector<2x32xf32>
    %36 = arith.mulf %29, %35 : vector<2x32xf32>
    %37 = arith.addf %34, %36 : vector<2x32xf32>
    %cst_18 = arith.constant dense<0.000000e+00> : vector<2x256xf32>
    %38 = tpu.matmul %37, %6, %cst_18 {dimension_numbers = #tpu.dot_dimension_numbers<[1], [0], [0], [1], [0, 0, 1, 1], [], []>} : vector<2x32xf32>, vector<32x256xf32>, vector<2x256xf32> -> vector<2x256xf32>
    %39 = arith.addf %38, %10 : vector<2x256xf32>
    %cst_19 = arith.constant dense<0.000000e+00> : vector<2x96xf32>
    %40 = tpu.matmul %15, %7, %cst_19 {dimension_numbers = #tpu.dot_dimension_numbers<[1], [0], [0], [1], [0, 0, 1, 1], [], []>} : vector<2x32xf32>, vector<32x96xf32>, vector<2x96xf32> -> vector<2x96xf32>
    %41 = arith.addf %40, %13 : vector<2x96xf32>
    %42 = vector.extract_strided_slice %39 {offsets = [0, 0], sizes = [2, 64], strides = [1, 1]} : vector<2x256xf32> to vector<2x64xf32>
    %43 = vector.extract_strided_slice %41 {offsets = [0, 0], sizes = [2, 64], strides = [1, 1]} : vector<2x96xf32> to vector<2x64xf32>
    %44 = arith.addf %42, %43 : vector<2x64xf32>
    %45 = arith.negf %44 : vector<2x64xf32>
    %46 = math.exp %45 : vector<2x64xf32>
    %cst_20 = arith.constant 1.000000e+00 : f32
    %47 = vector.broadcast %cst_20 : f32 to vector<2x64xf32>
    %48 = arith.addf %47, %46 : vector<2x64xf32>
    %49 = arith.divf %47, %48 : vector<2x64xf32>
    %50 = vector.extract_strided_slice %49 {offsets = [0, 0], sizes = [2, 32], strides = [1, 1]} : vector<2x64xf32> to vector<2x32xf32>
    %51 = vector.extract_strided_slice %49 {offsets = [0, 32], sizes = [2, 32], strides = [1, 1]} : vector<2x64xf32> to vector<2x32xf32>
    %52 = vector.extract_strided_slice %39 {offsets = [0, 64], sizes = [2, 32], strides = [1, 1]} : vector<2x256xf32> to vector<2x32xf32>
    %53 = vector.extract_strided_slice %41 {offsets = [0, 64], sizes = [2, 32], strides = [1, 1]} : vector<2x96xf32> to vector<2x32xf32>
    %54 = arith.mulf %50, %53 : vector<2x32xf32>
    %55 = arith.addf %52, %54 : vector<2x32xf32>
    %56 = math.tanh %55 : vector<2x32xf32>
    %57 = arith.subf %15, %56 : vector<2x32xf32>
    %58 = arith.mulf %51, %57 : vector<2x32xf32>
    %59 = arith.addf %56, %58 : vector<2x32xf32>
    %60 = vector.extract_strided_slice %39 {offsets = [0, 128], sizes = [2, 128], strides = [1, 1]} : vector<2x256xf32> to vector<2x128xf32>
    %c0_21 = arith.constant 0 : index
    %c0_22 = arith.constant 0 : index
    %c0_23 = arith.constant 0 : index
    %61 = vector.load %arg8[%c0_21, %c0_22, %c0_23] : memref<8x2x32xf32, #tpu.memory_space<vmem>>, vector<1x2x32xf32>
    %62 = vector.shape_cast %61 : vector<1x2x32xf32> to vector<2x32xf32>
    %63 = vector.shape_cast %59 : vector<2x32xf32> to vector<1x2x32xf32>
    tpu.vector_store %arg8[%c0_21, %c0_22, %c0_23], %63 {strides = array<i32>} : memref<8x2x32xf32, #tpu.memory_space<vmem>>, vector<1x2x32xf32>,
    %64 = vector.extract_strided_slice %5 {offsets = [2, 0], sizes = [2, 96], strides = [1, 1]} : vector<16x96xf32> to vector<2x96xf32>
    %65 = vector.extract_strided_slice %64 {offsets = [0, 0], sizes = [2, 64], strides = [1, 1]} : vector<2x96xf32> to vector<2x64xf32>
    %66 = vector.extract_strided_slice %60 {offsets = [0, 0], sizes = [2, 64], strides = [1, 1]} : vector<2x128xf32> to vector<2x64xf32>
    %67 = arith.addf %65, %66 : vector<2x64xf32>
    %68 = arith.negf %67 : vector<2x64xf32>
    %69 = math.exp %68 : vector<2x64xf32>
    %cst_24 = arith.constant 1.000000e+00 : f32
    %70 = vector.broadcast %cst_24 : f32 to vector<2x64xf32>
    %71 = arith.addf %70, %69 : vector<2x64xf32>
    %72 = arith.divf %70, %71 : vector<2x64xf32>
    %73 = vector.extract_strided_slice %72 {offsets = [0, 0], sizes = [2, 32], strides = [1, 1]} : vector<2x64xf32> to vector<2x32xf32>
    %74 = vector.extract_strided_slice %72 {offsets = [0, 32], sizes = [2, 32], strides = [1, 1]} : vector<2x64xf32> to vector<2x32xf32>
    %75 = vector.extract_strided_slice %64 {offsets = [0, 64], sizes = [2, 32], strides = [1, 1]} : vector<2x96xf32> to vector<2x32xf32>
    %76 = vector.extract_strided_slice %60 {offsets = [0, 64], sizes = [2, 32], strides = [1, 1]} : vector<2x128xf32> to vector<2x32xf32>
    %77 = arith.mulf %73, %76 : vector<2x32xf32>
    %78 = arith.addf %75, %77 : vector<2x32xf32>
    %79 = math.tanh %78 : vector<2x32xf32>
    %80 = arith.subf %37, %79 : vector<2x32xf32>
    %81 = arith.mulf %74, %80 : vector<2x32xf32>
    %82 = arith.addf %79, %81 : vector<2x32xf32>
    %cst_25 = arith.constant dense<0.000000e+00> : vector<2x256xf32>
    %83 = tpu.matmul %82, %6, %cst_25 {dimension_numbers = #tpu.dot_dimension_numbers<[1], [0], [0], [1], [0, 0, 1, 1], [], []>} : vector<2x32xf32>, vector<32x256xf32>, vector<2x256xf32> -> vector<2x256xf32>
    %84 = arith.addf %83, %10 : vector<2x256xf32>
    %cst_26 = arith.constant dense<0.000000e+00> : vector<2x96xf32>
    %85 = tpu.matmul %59, %7, %cst_26 {dimension_numbers = #tpu.dot_dimension_numbers<[1], [0], [0], [1], [0, 0, 1, 1], [], []>} : vector<2x32xf32>, vector<32x96xf32>, vector<2x96xf32> -> vector<2x96xf32>
    %86 = arith.addf %85, %13 : vector<2x96xf32>
    %87 = vector.extract_strided_slice %84 {offsets = [0, 0], sizes = [2, 64], strides = [1, 1]} : vector<2x256xf32> to vector<2x64xf32>
    %88 = vector.extract_strided_slice %86 {offsets = [0, 0], sizes = [2, 64], strides = [1, 1]} : vector<2x96xf32> to vector<2x64xf32>
    %89 = arith.addf %87, %88 : vector<2x64xf32>
    %90 = arith.negf %89 : vector<2x64xf32>
    %91 = math.exp %90 : vector<2x64xf32>
    %cst_27 = arith.constant 1.000000e+00 : f32
    %92 = vector.broadcast %cst_27 : f32 to vector<2x64xf32>
    %93 = arith.addf %92, %91 : vector<2x64xf32>
    %94 = arith.divf %92, %93 : vector<2x64xf32>
    %95 = vector.extract_strided_slice %94 {offsets = [0, 0], sizes = [2, 32], strides = [1, 1]} : vector<2x64xf32> to vector<2x32xf32>
    %96 = vector.extract_strided_slice %94 {offsets = [0, 32], sizes = [2, 32], strides = [1, 1]} : vector<2x64xf32> to vector<2x32xf32>
    %97 = vector.extract_strided_slice %84 {offsets = [0, 64], sizes = [2, 32], strides = [1, 1]} : vector<2x256xf32> to vector<2x32xf32>
    %98 = vector.extract_strided_slice %86 {offsets = [0, 64], sizes = [2, 32], strides = [1, 1]} : vector<2x96xf32> to vector<2x32xf32>
    %99 = arith.mulf %95, %98 : vector<2x32xf32>
    %100 = arith.addf %97, %99 : vector<2x32xf32>
    %101 = math.tanh %100 : vector<2x32xf32>
    %102 = arith.subf %59, %101 : vector<2x32xf32>
    %103 = arith.mulf %96, %102 : vector<2x32xf32>
    %104 = arith.addf %101, %103 : vector<2x32xf32>
    %105 = vector.extract_strided_slice %84 {offsets = [0, 128], sizes = [2, 128], strides = [1, 1]} : vector<2x256xf32> to vector<2x128xf32>
    %c1 = arith.constant 1 : index
    %c0_28 = arith.constant 0 : index
    %c0_29 = arith.constant 0 : index
    %106 = vector.load %arg8[%c1, %c0_28, %c0_29] : memref<8x2x32xf32, #tpu.memory_space<vmem>>, vector<1x2x32xf32>
    %107 = vector.shape_cast %106 : vector<1x2x32xf32> to vector<2x32xf32>
    %108 = vector.shape_cast %104 : vector<2x32xf32> to vector<1x2x32xf32>
    tpu.vector_store %arg8[%c1, %c0_28, %c0_29], %108 {strides = array<i32>} : memref<8x2x32xf32, #tpu.memory_space<vmem>>, vector<1x2x32xf32>,
    %109 = vector.extract_strided_slice %5 {offsets = [4, 0], sizes = [2, 96], strides = [1, 1]} : vector<16x96xf32> to vector<2x96xf32>
    %110 = vector.extract_strided_slice %109 {offsets = [0, 0], sizes = [2, 64], strides = [1, 1]} : vector<2x96xf32> to vector<2x64xf32>
    %111 = vector.extract_strided_slice %105 {offsets = [0, 0], sizes = [2, 64], strides = [1, 1]} : vector<2x128xf32> to vector<2x64xf32>
    %112 = arith.addf %110, %111 : vector<2x64xf32>
    %113 = arith.negf %112 : vector<2x64xf32>
    %114 = math.exp %113 : vector<2x64xf32>
    %cst_30 = arith.constant 1.000000e+00 : f32
    %115 = vector.broadcast %cst_30 : f32 to vector<2x64xf32>
    %116 = arith.addf %115, %114 : vector<2x64xf32>
    %117 = arith.divf %115, %116 : vector<2x64xf32>
    %118 = vector.extract_strided_slice %117 {offsets = [0, 0], sizes = [2, 32], strides = [1, 1]} : vector<2x64xf32> to vector<2x32xf32>
    %119 = vector.extract_strided_slice %117 {offsets = [0, 32], sizes = [2, 32], strides = [1, 1]} : vector<2x64xf32> to vector<2x32xf32>
    %120 = vector.extract_strided_slice %109 {offsets = [0, 64], sizes = [2, 32], strides = [1, 1]} : vector<2x96xf32> to vector<2x32xf32>
    %121 = vector.extract_strided_slice %105 {offsets = [0, 64], sizes = [2, 32], strides = [1, 1]} : vector<2x128xf32> to vector<2x32xf32>
    %122 = arith.mulf %118, %121 : vector<2x32xf32>
    %123 = arith.addf %120, %122 : vector<2x32xf32>
    %124 = math.tanh %123 : vector<2x32xf32>
    %125 = arith.subf %82, %124 : vector<2x32xf32>
    %126 = arith.mulf %119, %125 : vector<2x32xf32>
    %127 = arith.addf %124, %126 : vector<2x32xf32>
    %cst_31 = arith.constant dense<0.000000e+00> : vector<2x256xf32>
    %128 = tpu.matmul %127, %6, %cst_31 {dimension_numbers = #tpu.dot_dimension_numbers<[1], [0], [0], [1], [0, 0, 1, 1], [], []>} : vector<2x32xf32>, vector<32x256xf32>, vector<2x256xf32> -> vector<2x256xf32>
    %129 = arith.addf %128, %10 : vector<2x256xf32>
    %cst_32 = arith.constant dense<0.000000e+00> : vector<2x96xf32>
    %130 = tpu.matmul %104, %7, %cst_32 {dimension_numbers = #tpu.dot_dimension_numbers<[1], [0], [0], [1], [0, 0, 1, 1], [], []>} : vector<2x32xf32>, vector<32x96xf32>, vector<2x96xf32> -> vector<2x96xf32>
    %131 = arith.addf %130, %13 : vector<2x96xf32>
    %132 = vector.extract_strided_slice %129 {offsets = [0, 0], sizes = [2, 64], strides = [1, 1]} : vector<2x256xf32> to vector<2x64xf32>
    %133 = vector.extract_strided_slice %131 {offsets = [0, 0], sizes = [2, 64], strides = [1, 1]} : vector<2x96xf32> to vector<2x64xf32>
    %134 = arith.addf %132, %133 : vector<2x64xf32>
    %135 = arith.negf %134 : vector<2x64xf32>
    %136 = math.exp %135 : vector<2x64xf32>
    %cst_33 = arith.constant 1.000000e+00 : f32
    %137 = vector.broadcast %cst_33 : f32 to vector<2x64xf32>
    %138 = arith.addf %137, %136 : vector<2x64xf32>
    %139 = arith.divf %137, %138 : vector<2x64xf32>
    %140 = vector.extract_strided_slice %139 {offsets = [0, 0], sizes = [2, 32], strides = [1, 1]} : vector<2x64xf32> to vector<2x32xf32>
    %141 = vector.extract_strided_slice %139 {offsets = [0, 32], sizes = [2, 32], strides = [1, 1]} : vector<2x64xf32> to vector<2x32xf32>
    %142 = vector.extract_strided_slice %129 {offsets = [0, 64], sizes = [2, 32], strides = [1, 1]} : vector<2x256xf32> to vector<2x32xf32>
    %143 = vector.extract_strided_slice %131 {offsets = [0, 64], sizes = [2, 32], strides = [1, 1]} : vector<2x96xf32> to vector<2x32xf32>
    %144 = arith.mulf %140, %143 : vector<2x32xf32>
    %145 = arith.addf %142, %144 : vector<2x32xf32>
    %146 = math.tanh %145 : vector<2x32xf32>
    %147 = arith.subf %104, %146 : vector<2x32xf32>
    %148 = arith.mulf %141, %147 : vector<2x32xf32>
    %149 = arith.addf %146, %148 : vector<2x32xf32>
    %150 = vector.extract_strided_slice %129 {offsets = [0, 128], sizes = [2, 128], strides = [1, 1]} : vector<2x256xf32> to vector<2x128xf32>
    %c2 = arith.constant 2 : index
    %c0_34 = arith.constant 0 : index
    %c0_35 = arith.constant 0 : index
    %151 = vector.load %arg8[%c2, %c0_34, %c0_35] : memref<8x2x32xf32, #tpu.memory_space<vmem>>, vector<1x2x32xf32>
    %152 = vector.shape_cast %151 : vector<1x2x32xf32> to vector<2x32xf32>
    %153 = vector.shape_cast %149 : vector<2x32xf32> to vector<1x2x32xf32>
    tpu.vector_store %arg8[%c2, %c0_34, %c0_35], %153 {strides = array<i32>} : memref<8x2x32xf32, #tpu.memory_space<vmem>>, vector<1x2x32xf32>,
    %154 = vector.extract_strided_slice %5 {offsets = [6, 0], sizes = [2, 96], strides = [1, 1]} : vector<16x96xf32> to vector<2x96xf32>
    %155 = vector.extract_strided_slice %154 {offsets = [0, 0], sizes = [2, 64], strides = [1, 1]} : vector<2x96xf32> to vector<2x64xf32>
    %156 = vector.extract_strided_slice %150 {offsets = [0, 0], sizes = [2, 64], strides = [1, 1]} : vector<2x128xf32> to vector<2x64xf32>
    %157 = arith.addf %155, %156 : vector<2x64xf32>
    %158 = arith.negf %157 : vector<2x64xf32>
    %159 = math.exp %158 : vector<2x64xf32>
    %cst_36 = arith.constant 1.000000e+00 : f32
    %160 = vector.broadcast %cst_36 : f32 to vector<2x64xf32>
    %161 = arith.addf %160, %159 : vector<2x64xf32>
    %162 = arith.divf %160, %161 : vector<2x64xf32>
    %163 = vector.extract_strided_slice %162 {offsets = [0, 0], sizes = [2, 32], strides = [1, 1]} : vector<2x64xf32> to vector<2x32xf32>
    %164 = vector.extract_strided_slice %162 {offsets = [0, 32], sizes = [2, 32], strides = [1, 1]} : vector<2x64xf32> to vector<2x32xf32>
    %165 = vector.extract_strided_slice %154 {offsets = [0, 64], sizes = [2, 32], strides = [1, 1]} : vector<2x96xf32> to vector<2x32xf32>
    %166 = vector.extract_strided_slice %150 {offsets = [0, 64], sizes = [2, 32], strides = [1, 1]} : vector<2x128xf32> to vector<2x32xf32>
    %167 = arith.mulf %163, %166 : vector<2x32xf32>
    %168 = arith.addf %165, %167 : vector<2x32xf32>
    %169 = math.tanh %168 : vector<2x32xf32>
    %170 = arith.subf %127, %169 : vector<2x32xf32>
    %171 = arith.mulf %164, %170 : vector<2x32xf32>
    %172 = arith.addf %169, %171 : vector<2x32xf32>
    %cst_37 = arith.constant dense<0.000000e+00> : vector<2x256xf32>
    %173 = tpu.matmul %172, %6, %cst_37 {dimension_numbers = #tpu.dot_dimension_numbers<[1], [0], [0], [1], [0, 0, 1, 1], [], []>} : vector<2x32xf32>, vector<32x256xf32>, vector<2x256xf32> -> vector<2x256xf32>
    %174 = arith.addf %173, %10 : vector<2x256xf32>
    %cst_38 = arith.constant dense<0.000000e+00> : vector<2x96xf32>
    %175 = tpu.matmul %149, %7, %cst_38 {dimension_numbers = #tpu.dot_dimension_numbers<[1], [0], [0], [1], [0, 0, 1, 1], [], []>} : vector<2x32xf32>, vector<32x96xf32>, vector<2x96xf32> -> vector<2x96xf32>
    %176 = arith.addf %175, %13 : vector<2x96xf32>
    %177 = vector.extract_strided_slice %174 {offsets = [0, 0], sizes = [2, 64], strides = [1, 1]} : vector<2x256xf32> to vector<2x64xf32>
    %178 = vector.extract_strided_slice %176 {offsets = [0, 0], sizes = [2, 64], strides = [1, 1]} : vector<2x96xf32> to vector<2x64xf32>
    %179 = arith.addf %177, %178 : vector<2x64xf32>
    %180 = arith.negf %179 : vector<2x64xf32>
    %181 = math.exp %180 : vector<2x64xf32>
    %cst_39 = arith.constant 1.000000e+00 : f32
    %182 = vector.broadcast %cst_39 : f32 to vector<2x64xf32>
    %183 = arith.addf %182, %181 : vector<2x64xf32>
    %184 = arith.divf %182, %183 : vector<2x64xf32>
    %185 = vector.extract_strided_slice %184 {offsets = [0, 0], sizes = [2, 32], strides = [1, 1]} : vector<2x64xf32> to vector<2x32xf32>
    %186 = vector.extract_strided_slice %184 {offsets = [0, 32], sizes = [2, 32], strides = [1, 1]} : vector<2x64xf32> to vector<2x32xf32>
    %187 = vector.extract_strided_slice %174 {offsets = [0, 64], sizes = [2, 32], strides = [1, 1]} : vector<2x256xf32> to vector<2x32xf32>
    %188 = vector.extract_strided_slice %176 {offsets = [0, 64], sizes = [2, 32], strides = [1, 1]} : vector<2x96xf32> to vector<2x32xf32>
    %189 = arith.mulf %185, %188 : vector<2x32xf32>
    %190 = arith.addf %187, %189 : vector<2x32xf32>
    %191 = math.tanh %190 : vector<2x32xf32>
    %192 = arith.subf %149, %191 : vector<2x32xf32>
    %193 = arith.mulf %186, %192 : vector<2x32xf32>
    %194 = arith.addf %191, %193 : vector<2x32xf32>
    %195 = vector.extract_strided_slice %174 {offsets = [0, 128], sizes = [2, 128], strides = [1, 1]} : vector<2x256xf32> to vector<2x128xf32>
    %c3 = arith.constant 3 : index
    %c0_40 = arith.constant 0 : index
    %c0_41 = arith.constant 0 : index
    %196 = vector.load %arg8[%c3, %c0_40, %c0_41] : memref<8x2x32xf32, #tpu.memory_space<vmem>>, vector<1x2x32xf32>
    %197 = vector.shape_cast %196 : vector<1x2x32xf32> to vector<2x32xf32>
    %198 = vector.shape_cast %194 : vector<2x32xf32> to vector<1x2x32xf32>
    tpu.vector_store %arg8[%c3, %c0_40, %c0_41], %198 {strides = array<i32>} : memref<8x2x32xf32, #tpu.memory_space<vmem>>, vector<1x2x32xf32>,
    %199 = vector.extract_strided_slice %5 {offsets = [8, 0], sizes = [2, 96], strides = [1, 1]} : vector<16x96xf32> to vector<2x96xf32>
    %200 = vector.extract_strided_slice %199 {offsets = [0, 0], sizes = [2, 64], strides = [1, 1]} : vector<2x96xf32> to vector<2x64xf32>
    %201 = vector.extract_strided_slice %195 {offsets = [0, 0], sizes = [2, 64], strides = [1, 1]} : vector<2x128xf32> to vector<2x64xf32>
    %202 = arith.addf %200, %201 : vector<2x64xf32>
    %203 = arith.negf %202 : vector<2x64xf32>
    %204 = math.exp %203 : vector<2x64xf32>
    %cst_42 = arith.constant 1.000000e+00 : f32
    %205 = vector.broadcast %cst_42 : f32 to vector<2x64xf32>
    %206 = arith.addf %205, %204 : vector<2x64xf32>
    %207 = arith.divf %205, %206 : vector<2x64xf32>
    %208 = vector.extract_strided_slice %207 {offsets = [0, 0], sizes = [2, 32], strides = [1, 1]} : vector<2x64xf32> to vector<2x32xf32>
    %209 = vector.extract_strided_slice %207 {offsets = [0, 32], sizes = [2, 32], strides = [1, 1]} : vector<2x64xf32> to vector<2x32xf32>
    %210 = vector.extract_strided_slice %199 {offsets = [0, 64], sizes = [2, 32], strides = [1, 1]} : vector<2x96xf32> to vector<2x32xf32>
    %211 = vector.extract_strided_slice %195 {offsets = [0, 64], sizes = [2, 32], strides = [1, 1]} : vector<2x128xf32> to vector<2x32xf32>
    %212 = arith.mulf %208, %211 : vector<2x32xf32>
    %213 = arith.addf %210, %212 : vector<2x32xf32>
    %214 = math.tanh %213 : vector<2x32xf32>
    %215 = arith.subf %172, %214 : vector<2x32xf32>
    %216 = arith.mulf %209, %215 : vector<2x32xf32>
    %217 = arith.addf %214, %216 : vector<2x32xf32>
    %cst_43 = arith.constant dense<0.000000e+00> : vector<2x256xf32>
    %218 = tpu.matmul %217, %6, %cst_43 {dimension_numbers = #tpu.dot_dimension_numbers<[1], [0], [0], [1], [0, 0, 1, 1], [], []>} : vector<2x32xf32>, vector<32x256xf32>, vector<2x256xf32> -> vector<2x256xf32>
    %219 = arith.addf %218, %10 : vector<2x256xf32>
    %cst_44 = arith.constant dense<0.000000e+00> : vector<2x96xf32>
    %220 = tpu.matmul %194, %7, %cst_44 {dimension_numbers = #tpu.dot_dimension_numbers<[1], [0], [0], [1], [0, 0, 1, 1], [], []>} : vector<2x32xf32>, vector<32x96xf32>, vector<2x96xf32> -> vector<2x96xf32>
    %221 = arith.addf %220, %13 : vector<2x96xf32>
    %222 = vector.extract_strided_slice %219 {offsets = [0, 0], sizes = [2, 64], strides = [1, 1]} : vector<2x256xf32> to vector<2x64xf32>
    %223 = vector.extract_strided_slice %221 {offsets = [0, 0], sizes = [2, 64], strides = [1, 1]} : vector<2x96xf32> to vector<2x64xf32>
    %224 = arith.addf %222, %223 : vector<2x64xf32>
    %225 = arith.negf %224 : vector<2x64xf32>
    %226 = math.exp %225 : vector<2x64xf32>
    %cst_45 = arith.constant 1.000000e+00 : f32
    %227 = vector.broadcast %cst_45 : f32 to vector<2x64xf32>
    %228 = arith.addf %227, %226 : vector<2x64xf32>
    %229 = arith.divf %227, %228 : vector<2x64xf32>
    %230 = vector.extract_strided_slice %229 {offsets = [0, 0], sizes = [2, 32], strides = [1, 1]} : vector<2x64xf32> to vector<2x32xf32>
    %231 = vector.extract_strided_slice %229 {offsets = [0, 32], sizes = [2, 32], strides = [1, 1]} : vector<2x64xf32> to vector<2x32xf32>
    %232 = vector.extract_strided_slice %219 {offsets = [0, 64], sizes = [2, 32], strides = [1, 1]} : vector<2x256xf32> to vector<2x32xf32>
    %233 = vector.extract_strided_slice %221 {offsets = [0, 64], sizes = [2, 32], strides = [1, 1]} : vector<2x96xf32> to vector<2x32xf32>
    %234 = arith.mulf %230, %233 : vector<2x32xf32>
    %235 = arith.addf %232, %234 : vector<2x32xf32>
    %236 = math.tanh %235 : vector<2x32xf32>
    %237 = arith.subf %194, %236 : vector<2x32xf32>
    %238 = arith.mulf %231, %237 : vector<2x32xf32>
    %239 = arith.addf %236, %238 : vector<2x32xf32>
    %240 = vector.extract_strided_slice %219 {offsets = [0, 128], sizes = [2, 128], strides = [1, 1]} : vector<2x256xf32> to vector<2x128xf32>
    %c4 = arith.constant 4 : index
    %c0_46 = arith.constant 0 : index
    %c0_47 = arith.constant 0 : index
    %241 = vector.load %arg8[%c4, %c0_46, %c0_47] : memref<8x2x32xf32, #tpu.memory_space<vmem>>, vector<1x2x32xf32>
    %242 = vector.shape_cast %241 : vector<1x2x32xf32> to vector<2x32xf32>
    %243 = vector.shape_cast %239 : vector<2x32xf32> to vector<1x2x32xf32>
    tpu.vector_store %arg8[%c4, %c0_46, %c0_47], %243 {strides = array<i32>} : memref<8x2x32xf32, #tpu.memory_space<vmem>>, vector<1x2x32xf32>,
    %244 = vector.extract_strided_slice %5 {offsets = [10, 0], sizes = [2, 96], strides = [1, 1]} : vector<16x96xf32> to vector<2x96xf32>
    %245 = vector.extract_strided_slice %244 {offsets = [0, 0], sizes = [2, 64], strides = [1, 1]} : vector<2x96xf32> to vector<2x64xf32>
    %246 = vector.extract_strided_slice %240 {offsets = [0, 0], sizes = [2, 64], strides = [1, 1]} : vector<2x128xf32> to vector<2x64xf32>
    %247 = arith.addf %245, %246 : vector<2x64xf32>
    %248 = arith.negf %247 : vector<2x64xf32>
    %249 = math.exp %248 : vector<2x64xf32>
    %cst_48 = arith.constant 1.000000e+00 : f32
    %250 = vector.broadcast %cst_48 : f32 to vector<2x64xf32>
    %251 = arith.addf %250, %249 : vector<2x64xf32>
    %252 = arith.divf %250, %251 : vector<2x64xf32>
    %253 = vector.extract_strided_slice %252 {offsets = [0, 0], sizes = [2, 32], strides = [1, 1]} : vector<2x64xf32> to vector<2x32xf32>
    %254 = vector.extract_strided_slice %252 {offsets = [0, 32], sizes = [2, 32], strides = [1, 1]} : vector<2x64xf32> to vector<2x32xf32>
    %255 = vector.extract_strided_slice %244 {offsets = [0, 64], sizes = [2, 32], strides = [1, 1]} : vector<2x96xf32> to vector<2x32xf32>
    %256 = vector.extract_strided_slice %240 {offsets = [0, 64], sizes = [2, 32], strides = [1, 1]} : vector<2x128xf32> to vector<2x32xf32>
    %257 = arith.mulf %253, %256 : vector<2x32xf32>
    %258 = arith.addf %255, %257 : vector<2x32xf32>
    %259 = math.tanh %258 : vector<2x32xf32>
    %260 = arith.subf %217, %259 : vector<2x32xf32>
    %261 = arith.mulf %254, %260 : vector<2x32xf32>
    %262 = arith.addf %259, %261 : vector<2x32xf32>
    %cst_49 = arith.constant dense<0.000000e+00> : vector<2x256xf32>
    %263 = tpu.matmul %262, %6, %cst_49 {dimension_numbers = #tpu.dot_dimension_numbers<[1], [0], [0], [1], [0, 0, 1, 1], [], []>} : vector<2x32xf32>, vector<32x256xf32>, vector<2x256xf32> -> vector<2x256xf32>
    %264 = arith.addf %263, %10 : vector<2x256xf32>
    %cst_50 = arith.constant dense<0.000000e+00> : vector<2x96xf32>
    %265 = tpu.matmul %239, %7, %cst_50 {dimension_numbers = #tpu.dot_dimension_numbers<[1], [0], [0], [1], [0, 0, 1, 1], [], []>} : vector<2x32xf32>, vector<32x96xf32>, vector<2x96xf32> -> vector<2x96xf32>
    %266 = arith.addf %265, %13 : vector<2x96xf32>
    %267 = vector.extract_strided_slice %264 {offsets = [0, 0], sizes = [2, 64], strides = [1, 1]} : vector<2x256xf32> to vector<2x64xf32>
    %268 = vector.extract_strided_slice %266 {offsets = [0, 0], sizes = [2, 64], strides = [1, 1]} : vector<2x96xf32> to vector<2x64xf32>
    %269 = arith.addf %267, %268 : vector<2x64xf32>
    %270 = arith.negf %269 : vector<2x64xf32>
    %271 = math.exp %270 : vector<2x64xf32>
    %cst_51 = arith.constant 1.000000e+00 : f32
    %272 = vector.broadcast %cst_51 : f32 to vector<2x64xf32>
    %273 = arith.addf %272, %271 : vector<2x64xf32>
    %274 = arith.divf %272, %273 : vector<2x64xf32>
    %275 = vector.extract_strided_slice %274 {offsets = [0, 0], sizes = [2, 32], strides = [1, 1]} : vector<2x64xf32> to vector<2x32xf32>
    %276 = vector.extract_strided_slice %274 {offsets = [0, 32], sizes = [2, 32], strides = [1, 1]} : vector<2x64xf32> to vector<2x32xf32>
    %277 = vector.extract_strided_slice %264 {offsets = [0, 64], sizes = [2, 32], strides = [1, 1]} : vector<2x256xf32> to vector<2x32xf32>
    %278 = vector.extract_strided_slice %266 {offsets = [0, 64], sizes = [2, 32], strides = [1, 1]} : vector<2x96xf32> to vector<2x32xf32>
    %279 = arith.mulf %275, %278 : vector<2x32xf32>
    %280 = arith.addf %277, %279 : vector<2x32xf32>
    %281 = math.tanh %280 : vector<2x32xf32>
    %282 = arith.subf %239, %281 : vector<2x32xf32>
    %283 = arith.mulf %276, %282 : vector<2x32xf32>
    %284 = arith.addf %281, %283 : vector<2x32xf32>
    %285 = vector.extract_strided_slice %264 {offsets = [0, 128], sizes = [2, 128], strides = [1, 1]} : vector<2x256xf32> to vector<2x128xf32>
    %c5 = arith.constant 5 : index
    %c0_52 = arith.constant 0 : index
    %c0_53 = arith.constant 0 : index
    %286 = vector.load %arg8[%c5, %c0_52, %c0_53] : memref<8x2x32xf32, #tpu.memory_space<vmem>>, vector<1x2x32xf32>
    %287 = vector.shape_cast %286 : vector<1x2x32xf32> to vector<2x32xf32>
    %288 = vector.shape_cast %284 : vector<2x32xf32> to vector<1x2x32xf32>
    tpu.vector_store %arg8[%c5, %c0_52, %c0_53], %288 {strides = array<i32>} : memref<8x2x32xf32, #tpu.memory_space<vmem>>, vector<1x2x32xf32>,
    %289 = vector.extract_strided_slice %5 {offsets = [12, 0], sizes = [2, 96], strides = [1, 1]} : vector<16x96xf32> to vector<2x96xf32>
    %290 = vector.extract_strided_slice %289 {offsets = [0, 0], sizes = [2, 64], strides = [1, 1]} : vector<2x96xf32> to vector<2x64xf32>
    %291 = vector.extract_strided_slice %285 {offsets = [0, 0], sizes = [2, 64], strides = [1, 1]} : vector<2x128xf32> to vector<2x64xf32>
    %292 = arith.addf %290, %291 : vector<2x64xf32>
    %293 = arith.negf %292 : vector<2x64xf32>
    %294 = math.exp %293 : vector<2x64xf32>
    %cst_54 = arith.constant 1.000000e+00 : f32
    %295 = vector.broadcast %cst_54 : f32 to vector<2x64xf32>
    %296 = arith.addf %295, %294 : vector<2x64xf32>
    %297 = arith.divf %295, %296 : vector<2x64xf32>
    %298 = vector.extract_strided_slice %297 {offsets = [0, 0], sizes = [2, 32], strides = [1, 1]} : vector<2x64xf32> to vector<2x32xf32>
    %299 = vector.extract_strided_slice %297 {offsets = [0, 32], sizes = [2, 32], strides = [1, 1]} : vector<2x64xf32> to vector<2x32xf32>
    %300 = vector.extract_strided_slice %289 {offsets = [0, 64], sizes = [2, 32], strides = [1, 1]} : vector<2x96xf32> to vector<2x32xf32>
    %301 = vector.extract_strided_slice %285 {offsets = [0, 64], sizes = [2, 32], strides = [1, 1]} : vector<2x128xf32> to vector<2x32xf32>
    %302 = arith.mulf %298, %301 : vector<2x32xf32>
    %303 = arith.addf %300, %302 : vector<2x32xf32>
    %304 = math.tanh %303 : vector<2x32xf32>
    %305 = arith.subf %262, %304 : vector<2x32xf32>
    %306 = arith.mulf %299, %305 : vector<2x32xf32>
    %307 = arith.addf %304, %306 : vector<2x32xf32>
    %cst_55 = arith.constant dense<0.000000e+00> : vector<2x256xf32>
    %308 = tpu.matmul %307, %6, %cst_55 {dimension_numbers = #tpu.dot_dimension_numbers<[1], [0], [0], [1], [0, 0, 1, 1], [], []>} : vector<2x32xf32>, vector<32x256xf32>, vector<2x256xf32> -> vector<2x256xf32>
    %309 = arith.addf %308, %10 : vector<2x256xf32>
    %cst_56 = arith.constant dense<0.000000e+00> : vector<2x96xf32>
    %310 = tpu.matmul %284, %7, %cst_56 {dimension_numbers = #tpu.dot_dimension_numbers<[1], [0], [0], [1], [0, 0, 1, 1], [], []>} : vector<2x32xf32>, vector<32x96xf32>, vector<2x96xf32> -> vector<2x96xf32>
    %311 = arith.addf %310, %13 : vector<2x96xf32>
    %312 = vector.extract_strided_slice %309 {offsets = [0, 0], sizes = [2, 64], strides = [1, 1]} : vector<2x256xf32> to vector<2x64xf32>
    %313 = vector.extract_strided_slice %311 {offsets = [0, 0], sizes = [2, 64], strides = [1, 1]} : vector<2x96xf32> to vector<2x64xf32>
    %314 = arith.addf %312, %313 : vector<2x64xf32>
    %315 = arith.negf %314 : vector<2x64xf32>
    %316 = math.exp %315 : vector<2x64xf32>
    %cst_57 = arith.constant 1.000000e+00 : f32
    %317 = vector.broadcast %cst_57 : f32 to vector<2x64xf32>
    %318 = arith.addf %317, %316 : vector<2x64xf32>
    %319 = arith.divf %317, %318 : vector<2x64xf32>
    %320 = vector.extract_strided_slice %319 {offsets = [0, 0], sizes = [2, 32], strides = [1, 1]} : vector<2x64xf32> to vector<2x32xf32>
    %321 = vector.extract_strided_slice %319 {offsets = [0, 32], sizes = [2, 32], strides = [1, 1]} : vector<2x64xf32> to vector<2x32xf32>
    %322 = vector.extract_strided_slice %309 {offsets = [0, 64], sizes = [2, 32], strides = [1, 1]} : vector<2x256xf32> to vector<2x32xf32>
    %323 = vector.extract_strided_slice %311 {offsets = [0, 64], sizes = [2, 32], strides = [1, 1]} : vector<2x96xf32> to vector<2x32xf32>
    %324 = arith.mulf %320, %323 : vector<2x32xf32>
    %325 = arith.addf %322, %324 : vector<2x32xf32>
    %326 = math.tanh %325 : vector<2x32xf32>
    %327 = arith.subf %284, %326 : vector<2x32xf32>
    %328 = arith.mulf %321, %327 : vector<2x32xf32>
    %329 = arith.addf %326, %328 : vector<2x32xf32>
    %330 = vector.extract_strided_slice %309 {offsets = [0, 128], sizes = [2, 128], strides = [1, 1]} : vector<2x256xf32> to vector<2x128xf32>
    %c6 = arith.constant 6 : index
    %c0_58 = arith.constant 0 : index
    %c0_59 = arith.constant 0 : index
    %331 = vector.load %arg8[%c6, %c0_58, %c0_59] : memref<8x2x32xf32, #tpu.memory_space<vmem>>, vector<1x2x32xf32>
    %332 = vector.shape_cast %331 : vector<1x2x32xf32> to vector<2x32xf32>
    %333 = vector.shape_cast %329 : vector<2x32xf32> to vector<1x2x32xf32>
    tpu.vector_store %arg8[%c6, %c0_58, %c0_59], %333 {strides = array<i32>} : memref<8x2x32xf32, #tpu.memory_space<vmem>>, vector<1x2x32xf32>,
    %334 = vector.extract_strided_slice %5 {offsets = [14, 0], sizes = [2, 96], strides = [1, 1]} : vector<16x96xf32> to vector<2x96xf32>
    %335 = vector.extract_strided_slice %334 {offsets = [0, 0], sizes = [2, 64], strides = [1, 1]} : vector<2x96xf32> to vector<2x64xf32>
    %336 = vector.extract_strided_slice %330 {offsets = [0, 0], sizes = [2, 64], strides = [1, 1]} : vector<2x128xf32> to vector<2x64xf32>
    %337 = arith.addf %335, %336 : vector<2x64xf32>
    %338 = arith.negf %337 : vector<2x64xf32>
    %339 = math.exp %338 : vector<2x64xf32>
    %cst_60 = arith.constant 1.000000e+00 : f32
    %340 = vector.broadcast %cst_60 : f32 to vector<2x64xf32>
    %341 = arith.addf %340, %339 : vector<2x64xf32>
    %342 = arith.divf %340, %341 : vector<2x64xf32>
    %343 = vector.extract_strided_slice %342 {offsets = [0, 0], sizes = [2, 32], strides = [1, 1]} : vector<2x64xf32> to vector<2x32xf32>
    %344 = vector.extract_strided_slice %342 {offsets = [0, 32], sizes = [2, 32], strides = [1, 1]} : vector<2x64xf32> to vector<2x32xf32>
    %345 = vector.extract_strided_slice %334 {offsets = [0, 64], sizes = [2, 32], strides = [1, 1]} : vector<2x96xf32> to vector<2x32xf32>
    %346 = vector.extract_strided_slice %330 {offsets = [0, 64], sizes = [2, 32], strides = [1, 1]} : vector<2x128xf32> to vector<2x32xf32>
    %347 = arith.mulf %343, %346 : vector<2x32xf32>
    %348 = arith.addf %345, %347 : vector<2x32xf32>
    %349 = math.tanh %348 : vector<2x32xf32>
    %350 = arith.subf %307, %349 : vector<2x32xf32>
    %351 = arith.mulf %344, %350 : vector<2x32xf32>
    %352 = arith.addf %349, %351 : vector<2x32xf32>
    %cst_61 = arith.constant dense<0.000000e+00> : vector<2x256xf32>
    %353 = tpu.matmul %352, %6, %cst_61 {dimension_numbers = #tpu.dot_dimension_numbers<[1], [0], [0], [1], [0, 0, 1, 1], [], []>} : vector<2x32xf32>, vector<32x256xf32>, vector<2x256xf32> -> vector<2x256xf32>
    %354 = arith.addf %353, %10 : vector<2x256xf32>
    %cst_62 = arith.constant dense<0.000000e+00> : vector<2x96xf32>
    %355 = tpu.matmul %329, %7, %cst_62 {dimension_numbers = #tpu.dot_dimension_numbers<[1], [0], [0], [1], [0, 0, 1, 1], [], []>} : vector<2x32xf32>, vector<32x96xf32>, vector<2x96xf32> -> vector<2x96xf32>
    %356 = arith.addf %355, %13 : vector<2x96xf32>
    %357 = vector.extract_strided_slice %354 {offsets = [0, 0], sizes = [2, 64], strides = [1, 1]} : vector<2x256xf32> to vector<2x64xf32>
    %358 = vector.extract_strided_slice %356 {offsets = [0, 0], sizes = [2, 64], strides = [1, 1]} : vector<2x96xf32> to vector<2x64xf32>
    %359 = arith.addf %357, %358 : vector<2x64xf32>
    %360 = arith.negf %359 : vector<2x64xf32>
    %361 = math.exp %360 : vector<2x64xf32>
    %cst_63 = arith.constant 1.000000e+00 : f32
    %362 = vector.broadcast %cst_63 : f32 to vector<2x64xf32>
    %363 = arith.addf %362, %361 : vector<2x64xf32>
    %364 = arith.divf %362, %363 : vector<2x64xf32>
    %365 = vector.extract_strided_slice %364 {offsets = [0, 0], sizes = [2, 32], strides = [1, 1]} : vector<2x64xf32> to vector<2x32xf32>
    %366 = vector.extract_strided_slice %364 {offsets = [0, 32], sizes = [2, 32], strides = [1, 1]} : vector<2x64xf32> to vector<2x32xf32>
    %367 = vector.extract_strided_slice %354 {offsets = [0, 64], sizes = [2, 32], strides = [1, 1]} : vector<2x256xf32> to vector<2x32xf32>
    %368 = vector.extract_strided_slice %356 {offsets = [0, 64], sizes = [2, 32], strides = [1, 1]} : vector<2x96xf32> to vector<2x32xf32>
    %369 = arith.mulf %365, %368 : vector<2x32xf32>
    %370 = arith.addf %367, %369 : vector<2x32xf32>
    %371 = math.tanh %370 : vector<2x32xf32>
    %372 = arith.subf %329, %371 : vector<2x32xf32>
    %373 = arith.mulf %366, %372 : vector<2x32xf32>
    %374 = arith.addf %371, %373 : vector<2x32xf32>
    %c7 = arith.constant 7 : index
    %c0_64 = arith.constant 0 : index
    %c0_65 = arith.constant 0 : index
    %375 = vector.load %arg8[%c7, %c0_64, %c0_65] : memref<8x2x32xf32, #tpu.memory_space<vmem>>, vector<1x2x32xf32>
    %376 = vector.shape_cast %375 : vector<1x2x32xf32> to vector<2x32xf32>
    %377 = vector.shape_cast %374 : vector<2x32xf32> to vector<1x2x32xf32>
    tpu.vector_store %arg8[%c7, %c0_64, %c0_65], %377 {strides = array<i32>} : memref<8x2x32xf32, #tpu.memory_space<vmem>>, vector<1x2x32xf32>,
    %c0_66 = arith.constant 0 : index
    %c0_67 = arith.constant 0 : index
    %378 = vector.load %arg9[%c0_66, %c0_67] : memref<2x32xf32, #tpu.memory_space<vmem>>, vector<2x32xf32>
    tpu.vector_store %arg9[%c0_66, %c0_67], %374 {strides = array<i32>} : memref<2x32xf32, #tpu.memory_space<vmem>>, vector<2x32xf32>,
    return
  }
}

</mosaic_0001>

<bundles_post_ra>
// kernel: tpu_custom_call.1
= control target key start
LH: loop header
LB: loop body
LE: loop exit
PB: predicated region body
PF: predicated region fallthrough
CT: control target
= control target key end

     0   :  { %15 = vsyncpa [#allocation3], 0  ;;  %s2869_s0 = inlined_call_operand.vmem [shape: f32[16,4], index: 0, kind: input, shape index: {}]   ;;  %s2870_s1 = inlined_call_operand.vmem [shape: f32[4,96], index: 1, kind: input, shape index: {}]   ;;  %s2871_s2 = inlined_call_operand.hbm [shape: f32[1,96], index: 2, kind: input, shape index: {}]   ;;  %s2872_s3 = inlined_call_operand.hbm [shape: f32[32,256], index: 3, kind: input, shape index: {}]   ;;  %s2873_s4 = inlined_call_operand.vmem [shape: f32[1,256], index: 4, kind: input, shape index: {}]   ;;  %s2874_s5 = inlined_call_operand.vmem [shape: f32[32,96], index: 5, kind: input, shape index: {}]   ;;  %s2875_s6 = inlined_call_operand.vmem [shape: f32[1,96], index: 6, kind: input, shape index: {}]   ;;  %s2876_s7 = inlined_call_operand.vmem [shape: f32[1,128], index: 7, kind: input, shape index: {}]   ;;  %s2877_s8 = inlined_call_operand.hbm [shape: f32[8,2,32], index: 8, kind: output, shape index: {0}]   ;;  %s2878_s9 = inlined_call_operand.hbm [shape: f32[2,32], index: 9, kind: output, shape index: {1}]  }
   0x1   :  { %16 = vsyncpa [#allocation6], 0 }
   0x2   :  { %17 = vsyncpa [#allocation4], 0 }
   0x3   :  { %18 = vsyncpa [#allocation9], 0  ;;  %s2458_s30 = smov [#allocation2]   ;;  %s2459_s11 = smov [#allocation5]  }
   0x4   :  { %s29_s10 = sshll.u32 %s2458_s30, 4  ;;  %s38_s12 = sshll.u32 %s2459_s11, 4  ;;  %s30_s10 = int_to_ptr.vmem [resolvable:$true] %s29_s10  ;;  %s2521_s12 = int_to_ptr.vmem [resolvable:$true] %s38_s12 }
   0x5   :  { %s2362_s15 = scalar_lea.hbm %s2871_s2, 16 }
   0x6   :  { %p2363_p0 = scmp.ne.s32.totalorder %s2871_s2, %s2362_s15  ;;  %p2366_p1 = scmp.lt.u32.totalorder %s2362_s15, %s2871_s2 }
   0x8   :  { %p2368_p2 = pnand %p2366_p1, %p2363_p0 }
   0xa   :  { %2371 = shalt.err (!%p2368_p2)
}
   0xb   :  { %s2372_s20 = scalar_lea.vmem %s30_s10, 16  ;;  %s2376_s21 = scalar_lea.vmem %s30_s10, 32 }
   0xc   :  { %p2373_p3 = scmp.ne.s32.totalorder %s30_s10, %s2372_s20  ;;  %p2377_p4 = scmp.lt.s32.totalorder %s30_s10, %s30_s10 }
   0xd   :  { %p2378_p5 = scmp.lt.s32.totalorder %s2376_s21, %s2372_s20 }
   0xf   :  { %p2379_p6 = por %p2378_p5, %p2377_p4 }
  0x11   :  { %p2380_p7 = pnand %p2379_p6, %p2373_p3 }
  0x13   :  { %2383 = shalt.err (!%p2380_p7)
}
  0x14   :  { %32 = dma.hbm_to_vmem [thread:$0]  %s2871_s2, 16, %s30_s10, [#allocation3]  }
  0x15   :  { %s2384_s26 = scalar_lea.hbm %s2872_s3, 1024 }
  0x16   :  { %p2385_p8 = scmp.ne.s32.totalorder %s2872_s3, %s2384_s26  ;;  %p2388_p9 = scmp.lt.u32.totalorder %s2384_s26, %s2872_s3 }
  0x18   :  { %p2390_p10 = pnand %p2388_p9, %p2385_p8 }
  0x1a   :  { %2393 = shalt.err (!%p2390_p10)
}
  0x1b   :  { %s2394_s11 = scalar_lea.vmem %s2521_s12, 1024  ;;  %p2399_p12 = scmp.lt.s32.totalorder %s2521_s12, %s2521_s12 }
  0x1c   :  { %p2395_p11 = scmp.ne.s32.totalorder %s2521_s12, %s2394_s11  ;;  %p2400_p13 = scmp.lt.s32.totalorder %s2394_s11, %s2394_s11 }
  0x1e   :  { %p2401_p0 = por %p2400_p13, %p2399_p12 }
  0x20   :  { %p2402_p1 = pnand %p2401_p0, %p2395_p11 }
  0x22   :  { %2405 = shalt.err (!%p2402_p1)
}
  0x23   :  { %s2460_s2 = smov 256   ;;  %s2461_s10 = smov 16  }
  0x24   :  { %44 = dma.hbm_to_vmem [thread:$0]  %s2872_s3, 1024, %s2521_s12, [#allocation6], %s2460_s2, %s2460_s2, %s2461_s10  }
  0x25   :  { %2450 = dma.done.wait [#allocation3], 16  }
  0x26   :  { %2451 = vsyncadd [#allocation3], 4294967280 }
  0x27   :  { %2452 = dma.done.wait [#allocation6], 1024  }
  0x28   :  { %2453 = vsyncadd [#allocation6], 4294966272  ;;  %vm76_vm0 = vcmask 1043456   ;;  %vm69_vm1 = vcmask 31744   ;;  %v61_v0 = vld [vmem:[%s2870_s1] sm:$0xf]  ;;  %v169_v49 = vlaneseq }
  0x29   :  { %v59_v1 = vld [vmem:[%s2869_s0] sm:$0xff]  ;;  %v60_v2 = vld [vmem:[%s2869_s0 + $0x8] sm:$0xff]  ;;  %2048 = vmatprep.subr.msk.mxu0 %vm76_vm0, %v61_v0  ;;  %s2462_s21 = smov 64   ;;  %s2463_s0 = smov 96   ;;  %v165_v22 = vld [vmem:[%s2874_s5 + $0x10] sm:$0xff]  ;;  %v2464_v23 = vmov 0.0|0.0  }
  0x2a   :  { %2050 = vmatprep.mubr.msk.f32.mxu0 %vm69_vm1, %v59_v1  ;;  %v1973_v3 = vld [vmem:[%s2876_s7] ss:$0 sm:$0xff]  ;;  %2049 = vmatpush3.msk.msra.mxu0 %vm76_vm0, %v61_v0  ;;  %v164_v21 = vld [vmem:[%s2874_s5 + $0x8] sm:$0xff]  ;;  %v166_v25 = vld [vmem:[%s2874_s5 + $0x18] sm:$0xff]  ;;  %vm2465_vm2 = vmmov 0   ;;  %v2466_v26 = vmov 0.0  }
  0x2b   :  { %200 = vrot.lane.b32.xlu0 %v1973_v3, %s2462_s21  ;;  %2051 = vmatmul.mubr.msk.f32.vlgmr.msra.gmra.mrb[0].mxu0 %vm69_vm1, %v60_v2  ;;  %v1968_v4 = vld [vmem:[#allocation2] ss:$0 sm:$0xff]  ;;  %v156_v27 = vld [vmem:[#allocation5 + $0x8] sm:$0xff]  ;;  %v155_v30 = vld [vmem:[#allocation5] sm:$0xff]  ;;  %v2594_v33 = vpack.c.bf16 %v166_v25, %v165_v22  ;;  %vm224_vm3 = vcmask 261120   ;;  %v170_v50 = vshrl.u32 %v169_v49, 7 }
  0x2c   :  { %v163_v20 = vld [vmem:[%s2874_s5] sm:$0xff]  ;;  %2149 = vmatprep.subr.bf16.mxu0 %v2464_v23  ;;  %2061 = vmatprep.mubr.msk.f32.mxu0 %vm2465_vm2, %v2466_v26  ;;  %v157_v31 = vld [vmem:[#allocation5 + $0x10] sm:$0xff]  ;;  %v160_v32 = vld [vmem:[#allocation5 + $0x28] sm:$0xff]  ;;  %s2467_s5 = smov 32   ;;  %vm404_vm4 = vcmask 254976   ;;  %s2469_s2 = smov [#allocation8]  }
  0x2d   :  { %v2583_v24 = vpack.c.bf16 %v164_v21, %v163_v20  ;;  %v158_v28 = vld [vmem:[#allocation5 + $0x18] sm:$0xff]  ;;  %291 = vmatprep.mubr.f32.mxu1 %v2466_v26  ;;  %v2596_v34 = vpack.c.bf16 %v157_v31, %v155_v30  ;;  %v159_v36 = vld [vmem:[#allocation5 + $0x20] sm:$0xff]  ;;  %v161_v37 = vld [vmem:[#allocation5 + $0x30] sm:$0xff]  ;;  %v171_v51 = vsub.s32 0, %v170_v50  ;;  %v175_v53 = vsub.s32 1, %v170_v50  ;;  %s1954_s10 = sshll.u32 %s2469_s2, 4  ;;  %s2834_s10 = int_to_ptr.vmem [resolvable:$true] %s1954_s10 }
  0x2e   :  { %v2590_v29 = vpack.c.bf16 %v158_v28, %v156_v27  ;;  %v162_v35 = vld [vmem:[#allocation5 + $0x38] sm:$0xff]  ;;  %v2603_v39 = vpack.c.bf16 %v161_v37, %v159_v36 }
  0x2f   :  { %2151 = vmatpush3.bf16.msra.mxu0 %v2583_v24  ;;  %v2600_v38 = vpack.c.bf16 %v162_v35, %v160_v32  ;;  %v2622_v44 = vld [vmem:[%s2875_s6] ss:$0 sm:$0xff] }
  0x30   :  { %2152 = vmatprep.subr.bf16.mxu0 %v2464_v23  ;;  %2142 = vmatprep.subr.bf16.mxu1 %v2590_v29  ;;  %v167_v52 = vld [vmem:[%s2873_s4] sm:$0x3]  ;;  %s2468_s4 = smov [#allocation7]  }
  0x31   :  { %2144 = vmatpush1.bf16.msra.mxu1 %v2596_v34  ;;  %v2635_v54 = vrot.slane %v167_v52, %v171_v51  ;;  %v2637_v55 = vrot.slane %v167_v52, %v175_v53  ;;  %s1941_s11 = sshll.u32 %s2468_s4, 4  ;;  %s1942_s11 = int_to_ptr.vmem [resolvable:$true] %s1941_s11 }
  0x32   :  { %2146 = vmatprep.subr.bf16.mxu1 %v2600_v38  ;;  %s2406_s13 = scalar_lea.vmem %s1942_s11, 256  ;;  %p2411_p3 = scmp.lt.s32.totalorder %s1942_s11, %s1942_s11 }
  0x33   :  { %2154 = vmatpush3.bf16.msra.mxu0 %v2594_v33  ;;  %p2407_p2 = scmp.ne.s32.totalorder %s1942_s11, %s2406_s13  ;;  %p2412_p4 = scmp.lt.s32.totalorder %s2406_s13, %s2406_s13 }
  0x34   :  { %2163 = vmatprep.subr.bf16.mxu0 %v2464_v23 }
  0x35   :  { %2148 = vmatpush1.bf16.msra.mxu1 %v2603_v39  ;;  %p2413_p5 = por %p2412_p4, %p2411_p3 }
  0x36   :  { %2062 = vmatmul.mubr.f32.vlgmr.msra.gmra.mrb[2].mxu0 %v2466_v26  ;;  %2156 = vmatprep.subr.bf16.mxu1 %v2590_v29 }
  0x37   :  { %2165 = vmatpush3.bf16.msra.mxu0 %v2583_v24  ;;  %2072 = vmatprep.mubr.msk.f32.mxu0 %vm2465_vm2, %v2466_v26  ;;  %p2414_p6 = pnand %p2413_p5, %p2407_p2 }
  0x38   :  { %2166 = vmatprep.subr.bf16.mxu0 %v2464_v23 }
  0x3b   :  { %2168 = vmatpush3.bf16.msra.mxu0 %v2594_v33 }
  0x3c   :  { %2177 = vmatprep.subr.bf16.mxu0 %v2464_v23 }
  0x9d   :  { %v201_v13 = vpop.permute.xlu0 %200 }
  0xfe   :  { %v2052_v5 = vpop.f32.mrb[0].mxu0 }
  0xff   :  { %v2565_v6 = vadd.f32 %v2052_v5, %v1968_v4  ;;  %v146_v7 = vpop.f32.mrb[1].mxu0 }
 0x100   :  { %v2567_v8 = vadd.f32 %v1968_v4, %v146_v7 }
 0x102   :  { %v193_v9 = vadd.f32 %v1973_v3, %v2567_v8 }
 0x104   :  { %v1974_v10 = vmul.f32 -1.442695, %v193_v9 }
 0x106   :  { %2266 = vpow2.f32 %v1974_v10 }
 0x109   :  { %v367_v45 = vpop.f32.mrb[2].mxu0 }
 0x10a   :  { %v368_v46 = vadd.f32 %v2622_v44, %v367_v45  ;;  %v2063_v47 = vpop.f32.mrb[3].mxu0 }
 0x110   :  { %v2267_v11 = vpop.eup %2266 }
 0x111   :  { %v197_v12 = vadd.f32 1.0, %v2267_v11 }
 0x113   :  { %2268 = vrcp.f32 %v197_v12 }
 0x11d   :  { %v2269_v14 = vpop.eup %2268 }
 0x11e   :  { %v203_v15 = vmul.f32 %v2269_v14, %v201_v13 }
 0x120   :  { %205 = vrot.lane.b32.xlu0 %v203_v15, %s2462_s21 }
 0x192   :  { %v206_v16 = vpop.permute.xlu0 %205 }
 0x193   :  { %v208_v17 = vadd.f32 %v206_v16, %v2567_v8 }
 0x195   :  { %2270 = vtanh.f32 %v208_v17 }
 0x19f   :  { %v2271_v18 = vpop.eup %2270 }
 0x1a0   :  { %v210_v19 = vsub.f32 0.0, %v2271_v18 }
 0x1a2   :  { %212 = vrot.lane.b32.xlu1 %v210_v19, %s2463_s0 }
 0x214   :  { %v213_v40 = vpop.permute.xlu1 %212 }
 0x215   :  { %v215_v41 = vmul.f32 %v2269_v14, %v213_v40 }
 0x217   :  { %217 = vrot.lane.b32.xlu1 %v215_v41, %s2467_s5 }
 0x289   :  { %v218_v42 = vpop.permute.xlu1 %217 }
 0x28a   :  { %v220_v43 = vadd.f32 %v2271_v18, %v218_v42 }
 0x28c   :  { %222 = vrot.lane.b32.xlu0 %v220_v43, %s2462_s21 }
 0x290   :  { %379 = vrot.lane.b32.xlu0 %v368_v46, %s2462_s21 }
 0x2fe   :  { %v223_v48 = vpop.permute.xlu0 %222 }
 0x2ff   :  { %1975 = vmatmul.mubr.msk.f32.vlgmr.msra.gmra.mrb[0].mxu1 %vm224_vm3, %v223_v48 }
 0x300   :  { %2158 = vmatpush1.bf16.msra.mxu1 %v2596_v34  ;;  %511 = vmatprep.mubr.f32.mxu1 %v2466_v26 }
 0x301   :  { %2160 = vmatprep.subr.bf16.mxu1 %v2600_v38 }
 0x302   :  { %v380_v1 = vpop.permute.xlu0 %379 }
 0x304   :  { %2162 = vmatpush1.bf16.msra.mxu1 %v2603_v39 }
 0x305   :  { %2170 = vmatprep.subr.bf16.mxu1 %v2590_v29 }
 0x3d2   :  { %v293_v56 = vpop.f32.mrb[0].mxu1 }
 0x3d3   :  { %v294_v57 = vadd.f32 %v293_v56, %v2635_v54  ;;  %v295_v58 = vpop.f32.mrb[1].mxu1 }
 0x3d4   :  { %v296_v59 = vadd.f32 %v295_v58, %v2637_v55 }
 0x3d5   :  { %v371_v60 = vadd.f32 %v368_v46, %v294_v57 }
 0x3d6   :  { %v407_v61 = vrot.slane %v296_v59, 6 }
 0x3d7   :  { %v1976_v62 = vmul.f32 -1.442695, %v371_v60 }
 0x3d8   :  { %416 = vrot.lane.b32.xlu1 %v407_v61, %s2462_s21  ;;  %v409_v4 = vadd.f32 %v407_v61, %v2567_v8 }
 0x3d9   :  { %2272 = vpow2.f32 %v1976_v62 }
 0x3da   :  { %v1977_v5 = vmul.f32 -1.442695, %v409_v4 }
 0x3e3   :  { %v2273_v63 = vpop.eup %2272 }
 0x3e4   :  { %v375_v0 = vadd.f32 1.0, %v2273_v63 }
 0x3e6   :  { %2274 = vrcp.f32 %v375_v0 }
 0x3e7   :  { %2276 = vpow2.f32 %v1977_v5 }
 0x3f0   :  { %v2275_v2 = vpop.eup %2274 }
 0x3f1   :  { %v382_v3 = vmul.f32 %v2275_v2, %v380_v1  ;;  %v2277_v7 = vpop.eup %2276 }
 0x3f2   :  { %v413_v9 = vadd.f32 1.0, %v2277_v7 }
 0x3f3   :  { %384 = vrot.lane.b32.xlu0 %v382_v3, %s2462_s21 }
 0x3f4   :  { %2278 = vrcp.f32 %v413_v9 }
 0x3fe   :  { %v2279_v10 = vpop.eup %2278 }
 0x44a   :  { %v417_v11 = vpop.permute.xlu1 %416 }
 0x44b   :  { %v419_v12 = vmul.f32 %v2279_v10, %v417_v11 }
 0x44d   :  { %421 = vrot.lane.b32.xlu1 %v419_v12, %s2462_s21 }
 0x465   :  { %v385_v13 = vpop.permute.xlu0 %384 }
 0x466   :  { %v387_v14 = vadd.f32 %v385_v13, %v294_v57 }
 0x468   :  { %2280 = vtanh.f32 %v387_v14 }
 0x472   :  { %v2281_v15 = vpop.eup %2280 }
 0x473   :  { %v389_v16 = vsub.f32 0.0, %v2281_v15 }
 0x475   :  { %391 = vrot.lane.b32.xlu0 %v389_v16, %s2463_s0 }
 0x4bf   :  { %v422_v17 = vpop.permute.xlu1 %421 }
 0x4c0   :  { %v424_v18 = vadd.f32 %v422_v17, %v2567_v8 }
 0x4c2   :  { %2282 = vtanh.f32 %v424_v18 }
 0x4cc   :  { %v2283_v19 = vpop.eup %2282 }
 0x4cd   :  { %v427_v20 = vrot.slane %v2283_v19, 2 }
 0x4cf   :  { %v429_v21 = vsub.f32 %v220_v43, %v427_v20 }
 0x4d1   :  { %v431_v22 = vrot.slane %v429_v21, 6 }
 0x4d3   :  { %432 = vrot.lane.b32.xlu1 %v431_v22, %s2463_s0 }
 0x4e7   :  { %v392_v25 = vpop.permute.xlu0 %391 }
 0x4e8   :  { %v394_v27 = vmul.f32 %v2275_v2, %v392_v25 }
 0x4ea   :  { %396 = vrot.lane.b32.xlu0 %v394_v27, %s2467_s5 }
 0x545   :  { %v433_v28 = vpop.permute.xlu1 %432 }
 0x546   :  { %v435_v30 = vmul.f32 %v2279_v10, %v433_v28 }
 0x548   :  { %437 = vrot.lane.b32.xlu1 %v435_v30, %s2467_s5 }
 0x55c   :  { %v397_v31 = vpop.permute.xlu0 %396 }
 0x55d   :  { %v399_v32 = vadd.f32 %v2281_v15, %v397_v31 }
 0x55f   :  { %401 = vrot.lane.b32.xlu0 %v399_v32, %s2462_s21 }
 0x5ba   :  { %v438_v35 = vpop.permute.xlu1 %437 }
 0x5bb   :  { %v440_v36 = vadd.f32 %v2283_v19, %v438_v35 }
 0x5bd   :  { %v442_v37 = vrot.slane %v440_v36, 2 }
 0x5bf   :  { %443 = vrot.lane.b32.xlu1 %v442_v37, %s2462_s21 }
 0x5d1   :  { %v402_v40 = vpop.permute.xlu0 %401 }
 0x5d2   :  { %405 = vst.msk [vmem:[#allocation7] sm:$0x3] %vm404_vm4, %v402_v40  ;;  %2073 = vmatmul.mubr.msk.f32.vlgmr.msra.gmra.mrb[4].mxu0 %vm224_vm3, %v402_v40 }
 0x5d3   :  { %2179 = vmatpush3.bf16.msra.mxu0 %v2583_v24  ;;  %2083 = vmatprep.mubr.msk.f32.mxu0 %vm2465_vm2, %v2466_v26 }
 0x5d4   :  { %2180 = vmatprep.subr.bf16.mxu0 %v2464_v23 }
 0x5d7   :  { %2182 = vmatpush3.bf16.msra.mxu0 %v2594_v33 }
 0x5d8   :  { %2191 = vmatprep.subr.bf16.mxu0 %v2464_v23 }
 0x631   :  { %v444_v41 = vpop.permute.xlu1 %443 }
 0x632   :  { %1978 = vmatmul.mubr.msk.f32.vlgmr.msra.gmra.mrb[2].mxu1 %vm224_vm3, %v444_v41 }
 0x633   :  { %2172 = vmatpush1.bf16.msra.mxu1 %v2596_v34  ;;  %730 = vmatprep.mubr.f32.mxu1 %v2466_v26 }
 0x634   :  { %2174 = vmatprep.subr.bf16.mxu1 %v2600_v38 }
 0x637   :  { %2176 = vmatpush1.bf16.msra.mxu1 %v2603_v39 }
 0x638   :  { %2184 = vmatprep.subr.bf16.mxu1 %v2590_v29 }
 0x6a5   :  { %v586_v42 = vpop.f32.mrb[4].mxu0 }
 0x6a6   :  { %v587_v43 = vadd.f32 %v2622_v44, %v586_v42  ;;  %v2074_v45 = vpop.f32.mrb[5].mxu0 }
 0x6a8   :  { %598 = vrot.lane.b32.xlu0 %v587_v43, %s2462_s21 }
 0x705   :  { %v513_v46 = vpop.f32.mrb[2].mxu1 }
 0x706   :  { %v514_v47 = vadd.f32 %v513_v46, %v2635_v54  ;;  %v515_v48 = vpop.f32.mrb[3].mxu1 }
 0x707   :  { %v516_v49 = vadd.f32 %v515_v48, %v2637_v55 }
 0x708   :  { %v590_v50 = vadd.f32 %v587_v43, %v514_v47 }
 0x709   :  { %v626_v51 = vrot.slane %v516_v49, 4 }
 0x70a   :  { %v1980_v52 = vmul.f32 -1.442695, %v590_v50 }
 0x70b   :  { %635 = vrot.lane.b32.xlu1 %v626_v51, %s2462_s21  ;;  %v628_v60 = vadd.f32 %v626_v51, %v2567_v8 }
 0x70c   :  { %2284 = vpow2.f32 %v1980_v52 }
 0x70d   :  { %v1981_v61 = vmul.f32 -1.442695, %v628_v60 }
 0x716   :  { %v2285_v53 = vpop.eup %2284 }
 0x717   :  { %v594_v56 = vadd.f32 1.0, %v2285_v53 }
 0x719   :  { %2286 = vrcp.f32 %v594_v56 }
 0x71a   :  { %v599_v58 = vpop.permute.xlu0 %598  ;;  %2288 = vpow2.f32 %v1981_v61 }
 0x723   :  { %v2287_v57 = vpop.eup %2286 }
 0x724   :  { %v601_v59 = vmul.f32 %v2287_v57, %v599_v58  ;;  %v2289_v62 = vpop.eup %2288 }
 0x725   :  { %v632_v63 = vadd.f32 1.0, %v2289_v62 }
 0x726   :  { %603 = vrot.lane.b32.xlu0 %v601_v59, %s2462_s21 }
 0x727   :  { %2290 = vrcp.f32 %v632_v63 }
 0x731   :  { %v2291_v0 = vpop.eup %2290 }
 0x77d   :  { %v636_v1 = vpop.permute.xlu1 %635 }
 0x77e   :  { %v638_v2 = vmul.f32 %v2291_v0, %v636_v1 }
 0x780   :  { %640 = vrot.lane.b32.xlu1 %v638_v2, %s2462_s21 }
 0x798   :  { %v604_v3 = vpop.permute.xlu0 %603 }
 0x799   :  { %v606_v4 = vadd.f32 %v604_v3, %v514_v47 }
 0x79b   :  { %2292 = vtanh.f32 %v606_v4 }
 0x7a5   :  { %v2293_v5 = vpop.eup %2292 }
 0x7a6   :  { %v608_v7 = vsub.f32 %v399_v32, %v2293_v5 }
 0x7a8   :  { %610 = vrot.lane.b32.xlu0 %v608_v7, %s2463_s0 }
 0x7f2   :  { %v641_v9 = vpop.permute.xlu1 %640 }
 0x7f3   :  { %v643_v10 = vadd.f32 %v641_v9, %v2567_v8 }
 0x7f5   :  { %2294 = vtanh.f32 %v643_v10 }
 0x7ff   :  { %v2295_v11 = vpop.eup %2294 }
 0x800   :  { %v646_v12 = vrot.slane %v2295_v11, 2 }
 0x802   :  { %v648_v13 = vsub.f32 %v440_v36, %v646_v12 }
 0x804   :  { %v650_v14 = vrot.slane %v648_v13, 6 }
 0x806   :  { %651 = vrot.lane.b32.xlu1 %v650_v14, %s2463_s0 }
 0x81a   :  { %v611_v15 = vpop.permute.xlu0 %610 }
 0x81b   :  { %v613_v16 = vmul.f32 %v2287_v57, %v611_v15 }
 0x81d   :  { %615 = vrot.lane.b32.xlu0 %v613_v16, %s2467_s5 }
 0x878   :  { %v652_v17 = vpop.permute.xlu1 %651 }
 0x879   :  { %v654_v18 = vmul.f32 %v2291_v0, %v652_v17 }
 0x87b   :  { %656 = vrot.lane.b32.xlu1 %v654_v18, %s2467_s5 }
 0x88f   :  { %v616_v19 = vpop.permute.xlu0 %615 }
 0x890   :  { %v618_v20 = vadd.f32 %v2293_v5, %v616_v19 }
 0x892   :  { %620 = vrot.lane.b32.xlu0 %v618_v20, %s2462_s21 }
 0x8ed   :  { %v657_v21 = vpop.permute.xlu1 %656 }
 0x8ee   :  { %v659_v22 = vadd.f32 %v2295_v11, %v657_v21 }
 0x8f0   :  { %v661_v25 = vrot.slane %v659_v22, 4 }
 0x8f2   :  { %662 = vrot.lane.b32.xlu1 %v661_v25, %s2462_s21 }
 0x904   :  { %v621_v27 = vpop.permute.xlu0 %620 }
 0x905   :  { %624 = vst.msk [vmem:[#allocation7 + $0x2] sm:$0x3] %vm404_vm4, %v621_v27  ;;  %2084 = vmatmul.mubr.msk.f32.vlgmr.msra.gmra.mrb[6].mxu0 %vm224_vm3, %v621_v27 }
 0x906   :  { %2193 = vmatpush3.bf16.msra.mxu0 %v2583_v24  ;;  %2094 = vmatprep.mubr.msk.f32.mxu0 %vm2465_vm2, %v2466_v26 }
 0x907   :  { %2194 = vmatprep.subr.bf16.mxu0 %v2464_v23 }
 0x90a   :  { %2196 = vmatpush3.bf16.msra.mxu0 %v2594_v33 }
 0x90b   :  { %2205 = vmatprep.subr.bf16.mxu0 %v2464_v23 }
 0x964   :  { %v663_v28 = vpop.permute.xlu1 %662 }
 0x965   :  { %1982 = vmatmul.mubr.msk.f32.vlgmr.msra.gmra.mrb[4].mxu1 %vm224_vm3, %v663_v28 }
 0x966   :  { %2186 = vmatpush1.bf16.msra.mxu1 %v2596_v34  ;;  %949 = vmatprep.mubr.f32.mxu1 %v2466_v26 }
 0x967   :  { %2188 = vmatprep.subr.bf16.mxu1 %v2600_v38 }
 0x96a   :  { %2190 = vmatpush1.bf16.msra.mxu1 %v2603_v39 }
 0x96b   :  { %2198 = vmatprep.subr.bf16.mxu1 %v2590_v29 }
 0x9d8   :  { %v805_v30 = vpop.f32.mrb[6].mxu0 }
 0x9d9   :  { %v806_v31 = vadd.f32 %v2622_v44, %v805_v30  ;;  %v2085_v32 = vpop.f32.mrb[7].mxu0 }
 0x9db   :  { %817 = vrot.lane.b32.xlu0 %v806_v31, %s2462_s21 }
 0xa38   :  { %v732_v35 = vpop.f32.mrb[4].mxu1 }
 0xa39   :  { %v733_v36 = vadd.f32 %v732_v35, %v2635_v54  ;;  %v734_v37 = vpop.f32.mrb[5].mxu1 }
 0xa3a   :  { %v735_v40 = vadd.f32 %v734_v37, %v2637_v55 }
 0xa3b   :  { %v809_v41 = vadd.f32 %v806_v31, %v733_v36 }
 0xa3c   :  { %v845_v42 = vrot.slane %v735_v40, 2 }
 0xa3d   :  { %v1984_v43 = vmul.f32 -1.442695, %v809_v41 }
 0xa3e   :  { %854 = vrot.lane.b32.xlu1 %v845_v42, %s2462_s21  ;;  %v847_v50 = vadd.f32 %v845_v42, %v2567_v8 }
 0xa3f   :  { %2296 = vpow2.f32 %v1984_v43 }
 0xa40   :  { %v1985_v51 = vmul.f32 -1.442695, %v847_v50 }
 0xa49   :  { %v2297_v45 = vpop.eup %2296 }
 0xa4a   :  { %v813_v46 = vadd.f32 1.0, %v2297_v45 }
 0xa4c   :  { %2298 = vrcp.f32 %v813_v46 }
 0xa4d   :  { %v818_v48 = vpop.permute.xlu0 %817  ;;  %2300 = vpow2.f32 %v1985_v51 }
 0xa56   :  { %v2299_v47 = vpop.eup %2298 }
 0xa57   :  { %v820_v49 = vmul.f32 %v2299_v47, %v818_v48  ;;  %v2301_v52 = vpop.eup %2300 }
 0xa58   :  { %v851_v53 = vadd.f32 1.0, %v2301_v52 }
 0xa59   :  { %822 = vrot.lane.b32.xlu0 %v820_v49, %s2462_s21 }
 0xa5a   :  { %2302 = vrcp.f32 %v851_v53 }
 0xa64   :  { %v2303_v56 = vpop.eup %2302 }
 0xab0   :  { %v855_v57 = vpop.permute.xlu1 %854 }
 0xab1   :  { %v857_v58 = vmul.f32 %v2303_v56, %v855_v57 }
 0xab3   :  { %859 = vrot.lane.b32.xlu1 %v857_v58, %s2462_s21 }
 0xacb   :  { %v823_v59 = vpop.permute.xlu0 %822 }
 0xacc   :  { %v825_v60 = vadd.f32 %v823_v59, %v733_v36 }
 0xace   :  { %2304 = vtanh.f32 %v825_v60 }
 0xad8   :  { %v2305_v61 = vpop.eup %2304 }
 0xad9   :  { %v827_v62 = vsub.f32 %v618_v20, %v2305_v61 }
 0xadb   :  { %829 = vrot.lane.b32.xlu0 %v827_v62, %s2463_s0 }
 0xb25   :  { %v860_v63 = vpop.permute.xlu1 %859 }
 0xb26   :  { %v862_v0 = vadd.f32 %v860_v63, %v2567_v8 }
 0xb28   :  { %2306 = vtanh.f32 %v862_v0 }
 0xb32   :  { %v2307_v1 = vpop.eup %2306 }
 0xb33   :  { %v865_v2 = vrot.slane %v2307_v1, 2 }
 0xb35   :  { %v867_v3 = vsub.f32 %v659_v22, %v865_v2 }
 0xb37   :  { %v869_v4 = vrot.slane %v867_v3, 6 }
 0xb39   :  { %870 = vrot.lane.b32.xlu1 %v869_v4, %s2463_s0 }
 0xb4d   :  { %v830_v5 = vpop.permute.xlu0 %829 }
 0xb4e   :  { %v832_v7 = vmul.f32 %v2299_v47, %v830_v5 }
 0xb50   :  { %834 = vrot.lane.b32.xlu0 %v832_v7, %s2467_s5 }
 0xbab   :  { %v871_v9 = vpop.permute.xlu1 %870 }
 0xbac   :  { %v873_v10 = vmul.f32 %v2303_v56, %v871_v9 }
 0xbae   :  { %875 = vrot.lane.b32.xlu1 %v873_v10, %s2467_s5 }
 0xbc2   :  { %v835_v11 = vpop.permute.xlu0 %834 }
 0xbc3   :  { %v837_v12 = vadd.f32 %v2305_v61, %v835_v11 }
 0xbc5   :  { %839 = vrot.lane.b32.xlu0 %v837_v12, %s2462_s21 }
 0xc20   :  { %v876_v8 = vpop.permute.xlu1 %875 }
 0xc21   :  { %v878_v13 = vadd.f32 %v2307_v1, %v876_v8 }
 0xc23   :  { %v880_v14 = vrot.slane %v878_v13, 6 }
 0xc25   :  { %881 = vrot.lane.b32.xlu1 %v880_v14, %s2462_s21 }
 0xc37   :  { %v840_v15 = vpop.permute.xlu0 %839 }
 0xc38   :  { %843 = vst.msk [vmem:[#allocation7 + $0x4] sm:$0x3] %vm404_vm4, %v840_v15  ;;  %2095 = vmatmul.mubr.msk.f32.vlgmr.msra.gmra.mrb[8].mxu0 %vm224_vm3, %v840_v15 }
 0xc39   :  { %2207 = vmatpush3.bf16.msra.mxu0 %v2583_v24  ;;  %2105 = vmatprep.mubr.msk.f32.mxu0 %vm2465_vm2, %v2466_v26 }
 0xc3a   :  { %2208 = vmatprep.subr.bf16.mxu0 %v2464_v23 }
 0xc3d   :  { %2210 = vmatpush3.bf16.msra.mxu0 %v2594_v33 }
 0xc3e   :  { %2219 = vmatprep.subr.bf16.mxu0 %v2464_v23 }
 0xc97   :  { %v882_v16 = vpop.permute.xlu1 %881 }
 0xc98   :  { %1986 = vmatmul.mubr.msk.f32.vlgmr.msra.gmra.mrb[6].mxu1 %vm224_vm3, %v882_v16 }
 0xc99   :  { %2200 = vmatpush1.bf16.msra.mxu1 %v2596_v34  ;;  %1165 = vmatprep.mubr.f32.mxu1 %v2466_v26 }
 0xc9a   :  { %2202 = vmatprep.subr.bf16.mxu1 %v2600_v38 }
 0xc9d   :  { %2204 = vmatpush1.bf16.msra.mxu1 %v2603_v39 }
 0xc9e   :  { %2212 = vmatprep.subr.bf16.mxu1 %v2590_v29 }
 0xd0b   :  { %v1024_v17 = vpop.f32.mrb[8].mxu0 }
 0xd0c   :  { %v1025_v18 = vadd.f32 %v2622_v44, %v1024_v17  ;;  %v2096_v19 = vpop.f32.mrb[9].mxu0 }
 0xd0e   :  { %1036 = vrot.lane.b32.xlu0 %v1025_v18, %s2462_s21 }
 0xd6b   :  { %v951_v20 = vpop.f32.mrb[6].mxu1 }
 0xd6c   :  { %v952_v21 = vadd.f32 %v951_v20, %v2635_v54  ;;  %v953_v22 = vpop.f32.mrb[7].mxu1 }
 0xd6d   :  { %v954_v25 = vadd.f32 %v953_v22, %v2637_v55 }
 0xd6e   :  { %v1028_v27 = vadd.f32 %v1025_v18, %v952_v21 }
 0xd6f   :  { %1071 = vrot.lane.b32.xlu1 %v954_v25, %s2462_s21  ;;  %v1063_v37 = vadd.f32 %v954_v25, %v2565_v6 }
 0xd70   :  { %v1988_v28 = vmul.f32 -1.442695, %v1028_v27 }
 0xd71   :  { %v1989_v40 = vmul.f32 -1.442695, %v1063_v37 }
 0xd72   :  { %2308 = vpow2.f32 %v1988_v28 }
 0xd7c   :  { %v2309_v30 = vpop.eup %2308 }
 0xd7d   :  { %v1032_v31 = vadd.f32 1.0, %v2309_v30 }
 0xd7f   :  { %2310 = vrcp.f32 %v1032_v31 }
 0xd80   :  { %v1037_v35 = vpop.permute.xlu0 %1036  ;;  %2312 = vpow2.f32 %v1989_v40 }
 0xd89   :  { %v2311_v32 = vpop.eup %2310 }
 0xd8a   :  { %v1039_v36 = vmul.f32 %v2311_v32, %v1037_v35  ;;  %v2313_v41 = vpop.eup %2312 }
 0xd8b   :  { %v1067_v42 = vadd.f32 1.0, %v2313_v41 }
 0xd8c   :  { %1041 = vrot.lane.b32.xlu0 %v1039_v36, %s2462_s21 }
 0xd8d   :  { %2314 = vrcp.f32 %v1067_v42 }
 0xd97   :  { %v2315_v43 = vpop.eup %2314 }
 0xde1   :  { %v1072_v45 = vpop.permute.xlu1 %1071 }
 0xde2   :  { %v1074_v46 = vmul.f32 %v2315_v43, %v1072_v45 }
 0xde4   :  { %1076 = vrot.lane.b32.xlu1 %v1074_v46, %s2462_s21 }
 0xdfe   :  { %v1042_v47 = vpop.permute.xlu0 %1041 }
 0xdff   :  { %v1044_v48 = vadd.f32 %v1042_v47, %v952_v21 }
 0xe01   :  { %2316 = vtanh.f32 %v1044_v48 }
 0xe0b   :  { %v2317_v49 = vpop.eup %2316 }
 0xe0c   :  { %v1046_v50 = vsub.f32 %v837_v12, %v2317_v49 }
 0xe0e   :  { %1048 = vrot.lane.b32.xlu1 %v1046_v50, %s2463_s0 }
 0xe56   :  { %v1077_v51 = vpop.permute.xlu1 %1076 }
 0xe57   :  { %v1079_v52 = vadd.f32 %v1077_v51, %v2565_v6 }
 0xe59   :  { %2318 = vtanh.f32 %v1079_v52 }
 0xe63   :  { %v2319_v53 = vpop.eup %2318 }
 0xe64   :  { %v1082_v56 = vrot.slane %v2319_v53, 2 }
 0xe66   :  { %v1084_v57 = vsub.f32 %v878_v13, %v1082_v56 }
 0xe68   :  { %v1086_v58 = vrot.slane %v1084_v57, 6 }
 0xe6a   :  { %1087 = vrot.lane.b32.xlu0 %v1086_v58, %s2463_s0 }
 0xe80   :  { %v1049_v59 = vpop.permute.xlu1 %1048 }
 0xe81   :  { %v1051_v60 = vmul.f32 %v2311_v32, %v1049_v59 }
 0xe83   :  { %1053 = vrot.lane.b32.xlu1 %v1051_v60, %s2467_s5 }
 0xedc   :  { %v1088_v61 = vpop.permute.xlu0 %1087 }
 0xedd   :  { %v1090_v62 = vmul.f32 %v2315_v43, %v1088_v61 }
 0xedf   :  { %1092 = vrot.lane.b32.xlu0 %v1090_v62, %s2467_s5 }
 0xef5   :  { %v1054_v63 = vpop.permute.xlu1 %1053 }
 0xef6   :  { %v1056_v0 = vadd.f32 %v2317_v49, %v1054_v63 }
 0xef8   :  { %1058 = vrot.lane.b32.xlu1 %v1056_v0, %s2462_s21 }
 0xf51   :  { %v1093_v1 = vpop.permute.xlu0 %1092 }
 0xf52   :  { %v1095_v2 = vadd.f32 %v2319_v53, %v1093_v1 }
 0xf54   :  { %1097 = vrot.lane.b32.xlu0 %v1095_v2, %s2462_s21 }
 0xf6a   :  { %v1059_v3 = vpop.permute.xlu1 %1058 }
 0xf6b   :  { %1062 = vst.msk [vmem:[#allocation7 + $0x6] sm:$0x3] %vm404_vm4, %v1059_v3  ;;  %2106 = vmatmul.mubr.msk.f32.vlgmr.msra.gmra.mrb[10].mxu0 %vm224_vm3, %v1059_v3 }
 0xf6c   :  { %2221 = vmatpush3.bf16.msra.mxu0 %v2583_v24  ;;  %2116 = vmatprep.mubr.msk.f32.mxu0 %vm2465_vm2, %v2466_v26 }
 0xf6d   :  { %2222 = vmatprep.subr.bf16.mxu0 %v2464_v23 }
 0xf70   :  { %2224 = vmatpush3.bf16.msra.mxu0 %v2594_v33 }
 0xf71   :  { %2233 = vmatprep.subr.bf16.mxu0 %v2464_v23 }
 0xfc6   :  { %v1098_v4 = vpop.permute.xlu0 %1097 }
 0xfc7   :  { %1990 = vmatmul.mubr.msk.f32.vlgmr.msra.gmra.mrb[8].mxu1 %vm224_vm3, %v1098_v4 }
 0xfc8   :  { %2214 = vmatpush1.bf16.msra.mxu1 %v2596_v34  ;;  %1384 = vmatprep.mubr.f32.mxu1 %v2466_v26 }
 0xfc9   :  { %2216 = vmatprep.subr.bf16.mxu1 %v2600_v38 }
 0xfcc   :  { %2218 = vmatpush1.bf16.msra.mxu1 %v2603_v39 }
 0xfcd   :  { %2226 = vmatprep.subr.bf16.mxu1 %v2590_v29 }
0x103e   :  { %v1240_v5 = vpop.f32.mrb[10].mxu0 }
0x103f   :  { %v1241_v7 = vadd.f32 %v2622_v44, %v1240_v5  ;;  %v2107_v9 = vpop.f32.mrb[11].mxu0 }
0x1041   :  { %1252 = vrot.lane.b32.xlu1 %v1241_v7, %s2462_s21 }
0x109a   :  { %v1167_v10 = vpop.f32.mrb[8].mxu1 }
0x109b   :  { %v1168_v11 = vadd.f32 %v1167_v10, %v2635_v54  ;;  %v1169_v12 = vpop.f32.mrb[9].mxu1 }
0x109c   :  { %v1170_v8 = vadd.f32 %v1169_v12, %v2637_v55 }
0x109d   :  { %v1244_v13 = vadd.f32 %v1241_v7, %v1168_v11 }
0x109e   :  { %v1280_v14 = vrot.slane %v1170_v8, 6 }
0x109f   :  { %v1992_v15 = vmul.f32 -1.442695, %v1244_v13 }
0x10a0   :  { %1289 = vrot.lane.b32.xlu0 %v1280_v14, %s2462_s21  ;;  %v1282_v21 = vadd.f32 %v1280_v14, %v2565_v6 }
0x10a1   :  { %2320 = vpow2.f32 %v1992_v15 }
0x10a2   :  { %v1993_v22 = vmul.f32 -1.442695, %v1282_v21 }
0x10ab   :  { %v2321_v16 = vpop.eup %2320 }
0x10ac   :  { %v1248_v17 = vadd.f32 1.0, %v2321_v16 }
0x10ae   :  { %2322 = vrcp.f32 %v1248_v17 }
0x10af   :  { %2324 = vpow2.f32 %v1993_v22 }
0x10b3   :  { %v1253_v19 = vpop.permute.xlu1 %1252 }
0x10b8   :  { %v2323_v18 = vpop.eup %2322 }
0x10b9   :  { %v1255_v20 = vmul.f32 %v2323_v18, %v1253_v19  ;;  %v2325_v25 = vpop.eup %2324 }
0x10ba   :  { %v1286_v27 = vadd.f32 1.0, %v2325_v25 }
0x10bb   :  { %1257 = vrot.lane.b32.xlu1 %v1255_v20, %s2462_s21 }
0x10bc   :  { %2326 = vrcp.f32 %v1286_v27 }
0x10c6   :  { %v2327_v28 = vpop.eup %2326 }
0x1112   :  { %v1290_v30 = vpop.permute.xlu0 %1289 }
0x1113   :  { %v1292_v31 = vmul.f32 %v2327_v28, %v1290_v30 }
0x1115   :  { %1294 = vrot.lane.b32.xlu0 %v1292_v31, %s2462_s21 }
0x112d   :  { %v1258_v32 = vpop.permute.xlu1 %1257 }
0x112e   :  { %v1260_v35 = vadd.f32 %v1258_v32, %v1168_v11 }
0x1130   :  { %2328 = vtanh.f32 %v1260_v35 }
0x113a   :  { %v2329_v36 = vpop.eup %2328 }
0x113b   :  { %v1262_v37 = vsub.f32 %v1056_v0, %v2329_v36 }
0x113d   :  { %1264 = vrot.lane.b32.xlu1 %v1262_v37, %s2463_s0 }
0x1187   :  { %v1295_v40 = vpop.permute.xlu0 %1294 }
0x1188   :  { %v1297_v41 = vadd.f32 %v1295_v40, %v2565_v6 }
0x118a   :  { %2330 = vtanh.f32 %v1297_v41 }
0x1194   :  { %v2331_v42 = vpop.eup %2330 }
0x1195   :  { %v1300_v43 = vrot.slane %v2331_v42, 2 }
0x1197   :  { %v1302_v45 = vsub.f32 %v1095_v2, %v1300_v43 }
0x1199   :  { %v1304_v46 = vrot.slane %v1302_v45, 6 }
0x119b   :  { %1305 = vrot.lane.b32.xlu0 %v1304_v46, %s2463_s0 }
0x11af   :  { %v1265_v47 = vpop.permute.xlu1 %1264 }
0x11b0   :  { %v1267_v48 = vmul.f32 %v2323_v18, %v1265_v47 }
0x11b2   :  { %1269 = vrot.lane.b32.xlu1 %v1267_v48, %s2467_s5 }
0x120d   :  { %v1306_v49 = vpop.permute.xlu0 %1305 }
0x120e   :  { %v1308_v50 = vmul.f32 %v2327_v28, %v1306_v49 }
0x1210   :  { %1310 = vrot.lane.b32.xlu0 %v1308_v50, %s2467_s5 }
0x1224   :  { %v1270_v51 = vpop.permute.xlu1 %1269 }
0x1225   :  { %v1272_v52 = vadd.f32 %v2329_v36, %v1270_v51 }
0x1227   :  { %1274 = vrot.lane.b32.xlu1 %v1272_v52, %s2462_s21 }
0x1282   :  { %v1311_v53 = vpop.permute.xlu0 %1310 }
0x1283   :  { %v1313_v56 = vadd.f32 %v2331_v42, %v1311_v53 }
0x1285   :  { %v1315_v57 = vrot.slane %v1313_v56, 2 }
0x1287   :  { %1316 = vrot.lane.b32.xlu0 %v1315_v57, %s2462_s21 }
0x1299   :  { %v1275_v58 = vpop.permute.xlu1 %1274 }
0x129a   :  { %1278 = vst.msk [vmem:[#allocation7 + $0x8] sm:$0x3] %vm404_vm4, %v1275_v58  ;;  %2117 = vmatmul.mubr.msk.f32.vlgmr.msra.gmra.mrb[12].mxu0 %vm224_vm3, %v1275_v58 }
0x129b   :  { %2235 = vmatpush3.bf16.msra.mxu0 %v2583_v24  ;;  %2127 = vmatprep.mubr.msk.f32.mxu0 %vm2465_vm2, %v2466_v26 }
0x129c   :  { %2236 = vmatprep.subr.bf16.mxu0 %v2464_v23 }
0x129f   :  { %2238 = vmatpush3.bf16.msra.mxu0 %v2594_v33 }
0x12a0   :  { %2247 = vmatprep.subr.bf16.mxu0 %v2464_v23 }
0x12f9   :  { %v1317_v59 = vpop.permute.xlu0 %1316 }
0x12fa   :  { %1994 = vmatmul.mubr.msk.f32.vlgmr.msra.gmra.mrb[10].mxu1 %vm224_vm3, %v1317_v59 }
0x12fb   :  { %2228 = vmatpush1.bf16.msra.mxu1 %v2596_v34  ;;  %1603 = vmatprep.mubr.f32.mxu1 %v2466_v26 }
0x12fc   :  { %2230 = vmatprep.subr.bf16.mxu1 %v2600_v38 }
0x12ff   :  { %2232 = vmatpush1.bf16.msra.mxu1 %v2603_v39 }
0x1300   :  { %2240 = vmatprep.subr.bf16.mxu1 %v2590_v29 }
0x136d   :  { %v1459_v60 = vpop.f32.mrb[12].mxu0 }
0x136e   :  { %v1460_v61 = vadd.f32 %v2622_v44, %v1459_v60  ;;  %v2118_v62 = vpop.f32.mrb[13].mxu0 }
0x1370   :  { %1471 = vrot.lane.b32.xlu1 %v1460_v61, %s2462_s21 }
0x13cd   :  { %v1386_v63 = vpop.f32.mrb[10].mxu1 }
0x13ce   :  { %v1387_v0 = vadd.f32 %v1386_v63, %v2635_v54  ;;  %v1388_v1 = vpop.f32.mrb[11].mxu1 }
0x13cf   :  { %v1389_v2 = vadd.f32 %v1388_v1, %v2637_v55 }
0x13d0   :  { %v1463_v3 = vadd.f32 %v1460_v61, %v1387_v0 }
0x13d1   :  { %v1499_v4 = vrot.slane %v1389_v2, 4 }
0x13d2   :  { %v1996_v5 = vmul.f32 -1.442695, %v1463_v3 }
0x13d3   :  { %1508 = vrot.lane.b32.xlu0 %v1499_v4, %s2462_s21  ;;  %v1501_v12 = vadd.f32 %v1499_v4, %v2565_v6 }
0x13d4   :  { %2332 = vpow2.f32 %v1996_v5 }
0x13d5   :  { %v1997_v8 = vmul.f32 -1.442695, %v1501_v12 }
0x13de   :  { %v2333_v7 = vpop.eup %2332 }
0x13df   :  { %v1467_v29 = vadd.f32 1.0, %v2333_v7 }
0x13e1   :  { %2334 = vrcp.f32 %v1467_v29 }
0x13e2   :  { %v1472_v10 = vpop.permute.xlu1 %1471  ;;  %2336 = vpow2.f32 %v1997_v8 }
0x13eb   :  { %v2335_v9 = vpop.eup %2334 }
0x13ec   :  { %v1474_v11 = vmul.f32 %v2335_v9, %v1472_v10  ;;  %v2337_v13 = vpop.eup %2336 }
0x13ed   :  { %v1505_v14 = vadd.f32 1.0, %v2337_v13 }
0x13ee   :  { %1476 = vrot.lane.b32.xlu1 %v1474_v11, %s2462_s21 }
0x13ef   :  { %2338 = vrcp.f32 %v1505_v14 }
0x13f9   :  { %v2339_v15 = vpop.eup %2338 }
0x1445   :  { %v1509_v16 = vpop.permute.xlu0 %1508 }
0x1446   :  { %v1511_v17 = vmul.f32 %v2339_v15, %v1509_v16 }
0x1448   :  { %1513 = vrot.lane.b32.xlu0 %v1511_v17, %s2462_s21 }
0x1460   :  { %v1477_v18 = vpop.permute.xlu1 %1476 }
0x1461   :  { %v1479_v19 = vadd.f32 %v1477_v18, %v1387_v0 }
0x1463   :  { %2340 = vtanh.f32 %v1479_v19 }
0x146d   :  { %v2341_v20 = vpop.eup %2340 }
0x146e   :  { %v1481_v21 = vsub.f32 %v1272_v52, %v2341_v20 }
0x1470   :  { %1483 = vrot.lane.b32.xlu1 %v1481_v21, %s2463_s0 }
0x14ba   :  { %v1514_v22 = vpop.permute.xlu0 %1513 }
0x14bb   :  { %v1516_v25 = vadd.f32 %v1514_v22, %v2565_v6 }
0x14bd   :  { %2342 = vtanh.f32 %v1516_v25 }
0x14c7   :  { %v2343_v27 = vpop.eup %2342 }
0x14c8   :  { %v1519_v28 = vrot.slane %v2343_v27, 2 }
0x14ca   :  { %v1521_v30 = vsub.f32 %v1313_v56, %v1519_v28 }
0x14cc   :  { %v1523_v31 = vrot.slane %v1521_v30, 6 }
0x14ce   :  { %1524 = vrot.lane.b32.xlu0 %v1523_v31, %s2463_s0 }
0x14e2   :  { %v1484_v32 = vpop.permute.xlu1 %1483 }
0x14e3   :  { %v1486_v35 = vmul.f32 %v2335_v9, %v1484_v32 }
0x14e5   :  { %1488 = vrot.lane.b32.xlu1 %v1486_v35, %s2467_s5 }
0x1540   :  { %v1525_v36 = vpop.permute.xlu0 %1524 }
0x1541   :  { %v1527_v37 = vmul.f32 %v2339_v15, %v1525_v36 }
0x1543   :  { %1529 = vrot.lane.b32.xlu0 %v1527_v37, %s2467_s5 }
0x1557   :  { %v1489_v40 = vpop.permute.xlu1 %1488 }
0x1558   :  { %v1491_v41 = vadd.f32 %v2341_v20, %v1489_v40 }
0x155a   :  { %1493 = vrot.lane.b32.xlu1 %v1491_v41, %s2462_s21 }
0x15b5   :  { %v1530_v42 = vpop.permute.xlu0 %1529 }
0x15b6   :  { %v1532_v43 = vadd.f32 %v2343_v27, %v1530_v42 }
0x15b8   :  { %v1534_v45 = vrot.slane %v1532_v43, 4 }
0x15ba   :  { %1535 = vrot.lane.b32.xlu0 %v1534_v45, %s2462_s21 }
0x15cc   :  { %v1494_v46 = vpop.permute.xlu1 %1493 }
0x15cd   :  { %1497 = vst.msk [vmem:[#allocation7 + $0xa] sm:$0x3] %vm404_vm4, %v1494_v46  ;;  %2128 = vmatmul.mubr.msk.f32.vlgmr.msra.gmra.mrb[14].mxu0 %vm224_vm3, %v1494_v46 }
0x15ce   :  { %2249 = vmatpush3.bf16.msra.mxu0 %v2583_v24  ;;  %2138 = vmatprep.mubr.msk.f32.mxu0 %vm2465_vm2, %v2466_v26 }
0x15cf   :  { %2250 = vmatprep.subr.bf16.mxu0 %v2464_v23 }
0x15d2   :  { %2252 = vmatpush3.bf16.msra.mxu0 %v2594_v33 }
0x162c   :  { %v1536_v47 = vpop.permute.xlu0 %1535 }
0x162d   :  { %1998 = vmatmul.mubr.msk.f32.vlgmr.msra.gmra.mrb[12].mxu1 %vm224_vm3, %v1536_v47 }
0x162e   :  { %2242 = vmatpush1.bf16.msra.mxu1 %v2596_v34  ;;  %1822 = vmatprep.mubr.f32.mxu1 %v2466_v26 }
0x162f   :  { %2244 = vmatprep.subr.bf16.mxu1 %v2600_v38 }
0x1632   :  { %2246 = vmatpush1.bf16.msra.mxu1 %v2603_v39 }
0x16a0   :  { %v1678_v48 = vpop.f32.mrb[14].mxu0 }
0x16a1   :  { %v1679_v24 = vadd.f32 %v2622_v44, %v1678_v48  ;;  %v2129_v49 = vpop.f32.mrb[15].mxu0 }
0x16a3   :  { %1690 = vrot.lane.b32.xlu1 %v1679_v24, %s2462_s21 }
0x1700   :  { %v1605_v23 = vpop.f32.mrb[12].mxu1 }
0x1701   :  { %v1606_v33 = vadd.f32 %v1605_v23, %v2635_v54  ;;  %v1607_v50 = vpop.f32.mrb[13].mxu1 }
0x1702   :  { %v1608_v51 = vadd.f32 %v1607_v50, %v2637_v55 }
0x1703   :  { %v1682_v52 = vadd.f32 %v1679_v24, %v1606_v33 }
0x1704   :  { %v1718_v34 = vrot.slane %v1608_v51, 2 }
0x1705   :  { %v2000_v53 = vmul.f32 -1.442695, %v1682_v52 }
0x1706   :  { %1727 = vrot.lane.b32.xlu0 %v1718_v34, %s2462_s21  ;;  %v1720_v58 = vadd.f32 %v1718_v34, %v2565_v6 }
0x1707   :  { %2344 = vpow2.f32 %v2000_v53 }
0x1708   :  { %v2001_v59 = vmul.f32 -1.442695, %v1720_v58 }
0x1711   :  { %v2345_v26 = vpop.eup %2344 }
0x1712   :  { %v1686_v38 = vadd.f32 1.0, %v2345_v26 }
0x1714   :  { %2346 = vrcp.f32 %v1686_v38 }
0x1715   :  { %v1691_v56 = vpop.permute.xlu1 %1690  ;;  %2348 = vpow2.f32 %v2001_v59 }
0x171e   :  { %v2347_v39 = vpop.eup %2346 }
0x171f   :  { %v1693_v57 = vmul.f32 %v2347_v39, %v1691_v56  ;;  %v2349_v60 = vpop.eup %2348 }
0x1720   :  { %v1724_v55 = vadd.f32 1.0, %v2349_v60 }
0x1721   :  { %1695 = vrot.lane.b32.xlu1 %v1693_v57, %s2462_s21 }
0x1722   :  { %2350 = vrcp.f32 %v1724_v55 }
0x172c   :  { %v2351_v61 = vpop.eup %2350 }
0x1778   :  { %v1728_v62 = vpop.permute.xlu0 %1727 }
0x1779   :  { %v1730_v63 = vmul.f32 %v2351_v61, %v1728_v62 }
0x177b   :  { %1732 = vrot.lane.b32.xlu0 %v1730_v63, %s2462_s21 }
0x1793   :  { %v1696_v0 = vpop.permute.xlu1 %1695 }
0x1794   :  { %v1698_v1 = vadd.f32 %v1696_v0, %v1606_v33 }
0x1796   :  { %2352 = vtanh.f32 %v1698_v1 }
0x17a0   :  { %v2353_v2 = vpop.eup %2352 }
0x17a1   :  { %v1700_v3 = vsub.f32 %v1491_v41, %v2353_v2 }
0x17a3   :  { %1702 = vrot.lane.b32.xlu1 %v1700_v3, %s2463_s0 }
0x17ed   :  { %v1733_v4 = vpop.permute.xlu0 %1732 }
0x17ee   :  { %v1735_v5 = vadd.f32 %v1733_v4, %v2565_v6 }
0x17f0   :  { %2354 = vtanh.f32 %v1735_v5 }
0x17fa   :  { %v2355_v7 = vpop.eup %2354 }
0x17fb   :  { %v1738_v29 = vrot.slane %v2355_v7, 2 }
0x17fd   :  { %v1740_v9 = vsub.f32 %v1532_v43, %v1738_v29 }
0x17ff   :  { %v1742_v10 = vrot.slane %v1740_v9, 6 }
0x1801   :  { %1743 = vrot.lane.b32.xlu0 %v1742_v10, %s2463_s0 }
0x1815   :  { %v1703_v11 = vpop.permute.xlu1 %1702 }
0x1816   :  { %v1705_v12 = vmul.f32 %v2347_v39, %v1703_v11 }
0x1818   :  { %1707 = vrot.lane.b32.xlu1 %v1705_v12, %s2467_s5 }
0x1873   :  { %v1744_v8 = vpop.permute.xlu0 %1743 }
0x1874   :  { %v1746_v13 = vmul.f32 %v2351_v61, %v1744_v8 }
0x1876   :  { %1748 = vrot.lane.b32.xlu0 %v1746_v13, %s2467_s5 }
0x188a   :  { %v1708_v14 = vpop.permute.xlu1 %1707 }
0x188b   :  { %v1710_v15 = vadd.f32 %v2353_v2, %v1708_v14 }
0x188d   :  { %1712 = vrot.lane.b32.xlu1 %v1710_v15, %s2462_s21 }
0x18e8   :  { %v1749_v6 = vpop.permute.xlu0 %1748 }
0x18e9   :  { %v1751_v16 = vadd.f32 %v2355_v7, %v1749_v6 }
0x18eb   :  { %v1753_v17 = vrot.slane %v1751_v16, 6 }
0x18ed   :  { %1754 = vrot.lane.b32.xlu0 %v1753_v17, %s2462_s21 }
0x18ff   :  { %v1713_v18 = vpop.permute.xlu1 %1712 }
0x1900   :  { %1716 = vst.msk [vmem:[#allocation7 + $0xc] sm:$0x3] %vm404_vm4, %v1713_v18  ;;  %2139 = vmatmul.mubr.msk.f32.vlgmr.msra.gmra.mrb[16].mxu0 %vm224_vm3, %v1713_v18 }
0x195f   :  { %v1755_v19 = vpop.permute.xlu0 %1754 }
0x1960   :  { %2002 = vmatmul.mubr.msk.f32.vlgmr.msra.gmra.mrb[14].mxu1 %vm224_vm3, %v1755_v19 }
0x19d3   :  { %v1896_v20 = vpop.f32.mrb[16].mxu0 }
0x19d4   :  { %v1897_v21 = vadd.f32 %v2622_v44, %v1896_v20  ;;  %v2140_v22 = vpop.f32.mrb[17].mxu0 }
0x19d6   :  { %1908 = vrot.lane.b32.xlu1 %v1897_v21, %s2462_s21 }
0x1a33   :  { %v1824_v25 = vpop.f32.mrb[14].mxu1 }
0x1a34   :  { %v1825_v27 = vadd.f32 %v1824_v25, %v2635_v54  ;;  %v1826_v28 = vpop.f32.mrb[15].mxu1 }
0x1a36   :  { %v1900_v30 = vadd.f32 %v1897_v21, %v1825_v27 }
0x1a38   :  { %v2004_v31 = vmul.f32 -1.442695, %v1900_v30 }
0x1a3a   :  { %2356 = vpow2.f32 %v2004_v31 }
0x1a44   :  { %v2357_v32 = vpop.eup %2356 }
0x1a45   :  { %v1904_v35 = vadd.f32 1.0, %v2357_v32 }
0x1a47   :  { %2358 = vrcp.f32 %v1904_v35 }
0x1a48   :  { %v1909_v37 = vpop.permute.xlu1 %1908 }
0x1a51   :  { %v2359_v36 = vpop.eup %2358 }
0x1a52   :  { %v1911_v40 = vmul.f32 %v2359_v36, %v1909_v37 }
0x1a54   :  { %1913 = vrot.lane.b32.xlu0 %v1911_v40, %s2462_s21 }
0x1ac6   :  { %v1914_v41 = vpop.permute.xlu0 %1913 }
0x1ac7   :  { %v1916_v44 = vadd.f32 %v1914_v41, %v1825_v27 }
0x1ac9   :  { %2360 = vtanh.f32 %v1916_v44 }
0x1ad3   :  { %v2361_v42 = vpop.eup %2360 }
0x1ad4   :  { %v1918_v43 = vsub.f32 %v1710_v15, %v2361_v42 }
0x1ad6   :  { %1920 = vrot.lane.b32.xlu1 %v1918_v43, %s2463_s0 }
0x1b48   :  { %v1921_v54 = vpop.permute.xlu1 %1920 }
0x1b49   :  { %v1923_v45 = vmul.f32 %v2359_v36, %v1921_v54 }
0x1b4b   :  { %1925 = vrot.lane.b32.xlu0 %v1923_v45, %s2467_s5 }
0x1bbd   :  { %v1926_v46 = vpop.permute.xlu0 %1925 }
0x1bbe   :  { %v1928_v47 = vadd.f32 %v2361_v42, %v1926_v46 }
0x1bc0   :  { %1930 = vrot.lane.b32.xlu1 %v1928_v47, %s2462_s21 }
0x1c32   :  { %v1931_v48 = vpop.permute.xlu1 %1930 }
0x1c33   :  { %1934 = vst.msk [vmem:[#allocation7 + $0xe] sm:$0x3] %vm404_vm4, %v1931_v48  ;;  %1935 = vst.msk [vmem:[#allocation8] sm:$0x3] %vm404_vm4, %v1931_v48 }
0x1c34   :  { %2417 = shalt.err (!%p2414_p6)
}
0x1c35   :  { %s2418_s16 = scalar_lea.hbm %s2877_s8, 256 }
0x1c36   :  { %p2419_p7 = scmp.ne.s32.totalorder %s2877_s8, %s2418_s16  ;;  %p2422_p8 = scmp.lt.u32.totalorder %s2418_s16, %s2877_s8 }
0x1c38   :  { %p2424_p9 = pnand %p2422_p8, %p2419_p7 }
0x1c3a   :  { %2427 = shalt.err (!%p2424_p9)
}
0x1c3b   :  { %s2470_s3 = smov 2   ;;  %s2428_s0 = scalar_lea.vmem %s2834_s10, 32 }
0x1c3c   :  { %1947 = dma.vmem_to_hbm [thread:$0]  %s1942_s11, 256, %s2877_s8, [#allocation4], %s2467_s5, %s2467_s5, %s2470_s3  }
0x1c3d   :  { %p2429_p10 = scmp.ne.s32.totalorder %s2834_s10, %s2428_s0  ;;  %p2433_p11 = scmp.lt.s32.totalorder %s2834_s10, %s2834_s10 }
0x1c3e   :  { %p2434_p12 = scmp.lt.s32.totalorder %s2428_s0, %s2428_s0 }
0x1c40   :  { %p2435_p13 = por %p2434_p12, %p2433_p11 }
0x1c42   :  { %p2436_p0 = pnand %p2435_p13, %p2429_p10 }
0x1c44   :  { %2439 = shalt.err (!%p2436_p0)
}
0x1c45   :  { %s2440_s22 = scalar_lea.hbm %s2878_s9, 32 }
0x1c46   :  { %p2441_p1 = scmp.ne.s32.totalorder %s2878_s9, %s2440_s22  ;;  %p2444_p2 = scmp.lt.u32.totalorder %s2440_s22, %s2878_s9 }
0x1c48   :  { %p2446_p3 = pnand %p2444_p2, %p2441_p1 }
0x1c4a   :  { %2449 = shalt.err (!%p2446_p3)
}
0x1c4b   :  { %1957 = dma.vmem_to_hbm [thread:$0]  %s2834_s10, 32, %s2878_s9, [#allocation9]  }
0x1c4c   :  { %2454 = dma.done.wait [#allocation4], 256  }
0x1c4d   :  { %2455 = vsyncadd [#allocation4], 4294967040 }
0x1c4e   :  { %2456 = dma.done.wait [#allocation9], 32  }
0x1c4f   :  { %2457 = vsyncadd [#allocation9], 4294967264 }
0x1c50   :  { %1964 = vsyncpa [#allocation3], 1 }
0x1c51   :  { %1965 = vsyncpa [#allocation6], 1 }
0x1c52   :  { %1966 = vsyncpa [#allocation4], 1 }
0x1c53   :  { %1967 = vsyncpa [#allocation9], 1 }

</bundles_post_ra>
